<compile_context>
chip_gen: v6e
topology: v6e:2x2x1
jax: 0.10.0
libtpu: 0.0.40
codegen_flags: <defaults>
</compile_context>

<pallas_src>
import math
from functools import partial

import jax
import jax.numpy as jnp
from jax import lax
from jax.experimental import pallas as pl
from jax.experimental.pallas import tpu as pltpu


# ----------------------------- helpers -----------------------------------

def _gelu_exact(x):
    """Exact (erf) GELU — matches torch.nn.GELU() default."""
    return 0.5 * x * (1.0 + lax.erf(x * (1.0 / math.sqrt(2.0))))


def positional_encoding(L, E):
    pos = jnp.arange(L, dtype=jnp.float32)[:, None]
    denom = jnp.exp(jnp.arange(0, E, 2, dtype=jnp.float32) * (-math.log(10000.0) / E))
    pe = jnp.zeros((L, E), jnp.float32)
    pe = pe.at[:, 0::2].set(jnp.sin(pos * denom))
    pe = pe.at[:, 1::2].set(jnp.cos(pos * denom))
    return pe


# ----------------------------- Pallas kernel ------------------------------

def hypermix_fused_kernel(q_ref, pe_ref,
                          w1a_ref, b1a_ref, w2a_ref, b2a_ref,
                          w1b_ref, b1b_ref, w2b_ref, b2b_ref,
                          g_ref, beta_ref,
                          out_ref, y_scratch,
                          *, num_heads, head_dim, hyper_per_head, k_chunk, mxu_dtype):
    """One batch row: hypernetwork MLPs + token-mixing MLP for all heads + fused LayerNorm.

    q_ref  : (L, E)   query row-block (natural layout)
    pe_ref : (L, E)   sinusoidal positional encoding (added in-kernel)
    w1a/b1a/w2a/b2a : W1-generating ParallelMLP params, pre-transposed: (M,f,h),(M,1,h),(M,h,k),(M,1,k)
    w1b/b1b/w2b/b2b : W2-generating ParallelMLP params, same layout
    g_ref/beta_ref  : (1, E) LayerNorm affine params
    out_ref  : (L, E)  normalized token-mixed output (natural layout)
    y_scratch: (L, E)  f32 VMEM scratch for the pre-LayerNorm result
    """
    L = q_ref.shape[0]
    f = head_dim

    def mm(a, b):
        return jnp.dot(a.astype(mxu_dtype), b.astype(mxu_dtype),
                       preferred_element_type=jnp.float32)

    def mm_tl(a, b):
        # contract axis 0 of both: a (L, K), b (L, N) -> (K, N); avoids transposing b in HBM/VMEM
        return lax.dot_general(a.astype(mxu_dtype), b.astype(mxu_dtype),
                               (((0,), (0,)), ((), ())),
                               preferred_element_type=jnp.float32)

    x = q_ref[...].astype(jnp.float32)                 # (L, E)  token-mix operand
    xp = x + pe_ref[...]                               # (L, E)  hypernetwork input

    chunk_starts = list(range(0, hyper_per_head, k_chunk))

    for m in range(num_heads):                         # heads folded into one grid step
        lo, hi = m * f, (m + 1) * f
        xh = x[:, lo:hi]                               # (L, f)
        xph = xp[:, lo:hi]                             # (L, f)

        # Hypernetwork hidden activations (shared across all k-chunks).
        h1 = _gelu_exact(mm(xph, w1a_ref[m]) + b1a_ref[m])      # (L, h)
        h2 = _gelu_exact(mm(xph, w1b_ref[m]) + b1b_ref[m])      # (L, h)

        w2a = w2a_ref[m]                               # (h, k)
        w2b = w2b_ref[m]                               # (h, k)
        b2a = b2a_ref[m]                               # (1, k)
        b2b = b2b_ref[m]                               # (1, k)

        # Fuse hypernet output + token-mixing over k-chunks; never hold full (L, k) W1 & W2.
        acc = jnp.zeros((L, f), jnp.float32)
        for s in chunk_starts:
            e = min(s + k_chunk, hyper_per_head)
            W1c = mm(h1, w2a[:, s:e]) + b2a[:, s:e]    # (L, kc)
            W2c = mm(h2, w2b[:, s:e]) + b2b[:, s:e]    # (L, kc)
            t = _gelu_exact(mm_tl(W1c, xh))            # (kc, f) == gelu(q^T @ W1_c)^T
            acc = acc + mm(W2c, t)                     # (L, f)
        y_scratch[:, lo:hi] = acc

    # Fused LayerNorm over the feature axis E (epilogue) — no second pallas_call needed.
    y = y_scratch[...]
    mean = jnp.mean(y, axis=-1, keepdims=True)
    c = y - mean
    var = jnp.mean(c * c, axis=-1, keepdims=True)
    yn = c * lax.rsqrt(var + 1e-5)
    out_ref[...] = (yn * g_ref[...] + beta_ref[...]).astype(out_ref.dtype)


# ----------------------------- wrapper ------------------------------------

def hypermixing_forward(query, key, value, params, num_heads, *,
                        mxu_dtype=jnp.float32, k_chunk=256):
    """Pallas implementation of HyperMixing.forward (key/value unused, like the module).

    `params` must be in the prepared (pre-transposed) layout from `prepare_params`.
    """
    del key, value
    B, L, E = query.shape
    M = num_heads
    f = E // M
    h = params["w1"]["fc1_w"].shape[2]      # hidden per head      (prepared: (M, f, h))
    k = params["w1"]["fc2_w"].shape[2]      # hypernet size / head (prepared: (M, h, k))
    kc = min(k_chunk, k)

    pe = positional_encoding(L, E)          # (L, E), added in-kernel (hyp_input never hits HBM)

    p1, p2 = params["w1"], params["w2"]

    kern = partial(hypermix_fused_kernel, num_heads=M, head_dim=f,
                   hyper_per_head=k, k_chunk=kc, mxu_dtype=mxu_dtype)

    out = pl.pallas_call(
        kern,
        out_shape=jax.ShapeDtypeStruct((B, L, E), jnp.float32),
        grid=(B,),
        in_specs=[
            pl.BlockSpec((None, L, E), lambda b: (b, 0, 0)),    # query (natural layout)
            pl.BlockSpec((L, E), lambda b: (0, 0)),             # positional encoding (resident)
            pl.BlockSpec((M, f, h), lambda b: (0, 0, 0)),       # w1 fc1_w  (pre-transposed)
            pl.BlockSpec((M, 1, h), lambda b: (0, 0, 0)),       # w1 fc1_b
            pl.BlockSpec((M, h, k), lambda b: (0, 0, 0)),       # w1 fc2_w  (pre-transposed)
            pl.BlockSpec((M, 1, k), lambda b: (0, 0, 0)),       # w1 fc2_b
            pl.BlockSpec((M, f, h), lambda b: (0, 0, 0)),       # w2 fc1_w
            pl.BlockSpec((M, 1, h), lambda b: (0, 0, 0)),       # w2 fc1_b
            pl.BlockSpec((M, h, k), lambda b: (0, 0, 0)),       # w2 fc2_w
            pl.BlockSpec((M, 1, k), lambda b: (0, 0, 0)),       # w2 fc2_b
            pl.BlockSpec((1, E), lambda b: (0, 0)),             # LN gamma
            pl.BlockSpec((1, E), lambda b: (0, 0)),             # LN beta
        ],
        out_specs=pl.BlockSpec((None, L, E), lambda b: (b, 0, 0)),
        scratch_shapes=[pltpu.VMEM((L, E), jnp.float32)],
        compiler_params=pltpu.CompilerParams(
            dimension_semantics=("parallel",),          # batch axis shards across TCs
            vmem_limit_bytes=48 * 1024 * 1024),         # sized below v7x's 64 MiB physical VMEM
    )(query, pe,
      p1["fc1_w"], p1["fc1_b"], p1["fc2_w"], p1["fc2_b"],
      p2["fc1_w"], p2["fc1_b"], p2["fc2_w"], p2["fc2_b"],
      params["ln_g"], params["ln_b"])

    # The reference module always returns an all-zero attention map; in production this
    # materialization should simply be dropped (pure wasted HBM bandwidth).
    attn_weights = jnp.zeros((B, L, L), jnp.float32)
    return out, attn_weights


# ----------------------------- params & reference --------------------------

def init_params(rng, E, hypernet_size, num_heads):
    """Parameters in the PyTorch module layout:
       fc1_w (M, h, f), fc1_b (M, h), fc2_w (M, k, h), fc2_b (M, k)."""
    M = num_heads
    f = E // M
    h = E // M
    k = hypernet_size // M
    ks = jax.random.split(rng, 8)

    def xavier(kk, shape, gain=math.sqrt(2.0)):
        rf = math.prod(shape[2:]) if len(shape) > 2 else 1
        fan_in, fan_out = shape[1] * rf, shape[0] * rf
        bound = gain * math.sqrt(6.0 / (fan_in + fan_out))
        return jax.random.uniform(kk, shape, jnp.float32, -bound, bound)

    def mlp(k4):
        return dict(
            fc1_w=xavier(k4[0], (M, h, f)),
            fc1_b=xavier(k4[1], (M, h)),
            fc2_w=xavier(k4[2], (M, k, h)),
            fc2_b=xavier(k4[3], (M, k)),
        )

    return dict(
        w1=mlp(ks[0:4]),
        w2=mlp(ks[4:8]),
        ln_g=jnp.ones((1, E), jnp.float32),
        ln_b=jnp.zeros((1, E), jnp.float32),
    )


def prepare_params(params):
    """One-time host-side repack: transpose weights so every in-kernel matmul is a plain
    (.., K) x (K, ..) contraction — removes per-grid-step XLU transposes of loop-invariant
    weights."""
    def prep(p):
        return dict(
            fc1_w=jnp.swapaxes(p["fc1_w"], 1, 2),   # (M, f, h)
            fc1_b=p["fc1_b"][:, None, :],           # (M, 1, h)
            fc2_w=jnp.swapaxes(p["fc2_w"], 1, 2),   # (M, h, k)
            fc2_b=p["fc2_b"][:, None, :],           # (M, 1, k)
        )
    return dict(w1=prep(params["w1"]), w2=prep(params["w2"]),
                ln_g=params["ln_g"], ln_b=params["ln_b"])


def reference_forward(query, params, num_heads):
    """Pure-JAX replication of the PyTorch forward (module-layout params)."""
    B, L, E = query.shape
    M = num_heads
    f = E // M
    gelu = lambda x: jax.nn.gelu(x, approximate=False)
    hyp_input = query + positional_encoding(L, E)[None]

    def pmlp(x, p):
        x = x.reshape(B, L, M, f)
        x = jnp.einsum('blmf,mhf->bmlh', x, p["fc1_w"]) + p["fc1_b"][None, :, None, :]
        x = gelu(x)
        x = jnp.einsum('bmlh,mkh->bmlk', x, p["fc2_w"]) + p["fc2_b"][None, :, None, :]
        return x

    W1 = pmlp(hyp_input, params["w1"]).reshape(B * M, L, -1)
    W2 = pmlp(hyp_input, params["w2"]).reshape(B * M, L, -1)
    out = query.transpose(0, 2, 1).reshape(B * M, f, L)
    out = gelu(jnp.matmul(out, W1))
    out = jnp.matmul(out, W2.transpose(0, 2, 1))
    out = out.reshape(B, E, L).transpose(0, 2, 1)

    mean = out.mean(-1, keepdims=True)
    var = ((out - mean) ** 2).mean(-1, keepdims=True)
    out = (out - mean) / jnp.sqrt(var + 1e-5) * params["ln_g"][0] + params["ln_b"][0]
    return out


# ----------------------------- main ----------------------------------------

if __name__ == "__main__":
    B, L, E = 2, 8, 32          # batch, seq_len, embedding dim
    HYPER = 64                  # hypernet_size
    HEADS = 4                   # num_heads  (f = 8, h = 8, k = 16 per head)

    root = jax.random.PRNGKey(0)
    k_q, k_p = jax.random.split(root)
    query = jax.random.normal(k_q, (B, L, E), jnp.float32)
    params = init_params(k_p, E, HYPER, HEADS)
    prepared = prepare_params(params)           # one-time host-side weight repack

    out, attn = hypermixing_forward(query, query, query, prepared, HEADS)
    out = jax.block_until_ready(out)
    attn = jax.block_until_ready(attn)

    ref = reference_forward(query, params, HEADS)
    err = float(jnp.max(jnp.abs(out - ref)))
    assert out.shape == (B, L, E)
    assert attn.shape == (B, L, L)
    assert err < 1e-4, f"max abs error {err}"
    print("KERNEL_OK")
</pallas_src>

<mosaic_0001>
module attributes {stable_mosaic.version = 11 : i64} {
  func.func @hypermix_fused_kernel(%arg0: i32, %arg1: memref<1x8x32xf32, #tpu.memory_space<vmem>>, %arg2: memref<8x32xf32, #tpu.memory_space<vmem>>, %arg3: memref<4x8x8xf32, #tpu.memory_space<vmem>>, %arg4: memref<4x1x8xf32, #tpu.memory_space<vmem>>, %arg5: memref<4x8x16xf32, #tpu.memory_space<vmem>>, %arg6: memref<4x1x16xf32, #tpu.memory_space<vmem>>, %arg7: memref<4x8x8xf32, #tpu.memory_space<vmem>>, %arg8: memref<4x1x8xf32, #tpu.memory_space<vmem>>, %arg9: memref<4x8x16xf32, #tpu.memory_space<vmem>>, %arg10: memref<4x1x16xf32, #tpu.memory_space<vmem>>, %arg11: memref<1x32xf32, #tpu.memory_space<vmem>>, %arg12: memref<1x32xf32, #tpu.memory_space<vmem>>, %arg13: memref<1x8x32xf32, #tpu.memory_space<vmem>>, %arg14: memref<8x32xf32, #tpu.memory_space<vmem>>) attributes {dimension_semantics = [#tpu.dimension_semantics<parallel>], iteration_bounds = array<i64: 2>, scalar_prefetch = 0 : i64, scratch_operands = 1 : i64, tpu.core_type = #tpu.core_type<tc>, window_params = [{transform_indices = @transform_0, window_bounds = array<i64: 1, 8, 32>}, {pipeline_mode = #tpu.pipeline_mode<synchronous>, transform_indices = @transform_1, window_bounds = array<i64: 8, 32>}, {pipeline_mode = #tpu.pipeline_mode<synchronous>, transform_indices = @transform_2, window_bounds = array<i64: 4, 8, 8>}, {pipeline_mode = #tpu.pipeline_mode<synchronous>, transform_indices = @transform_3, window_bounds = array<i64: 4, 1, 8>}, {pipeline_mode = #tpu.pipeline_mode<synchronous>, transform_indices = @transform_4, window_bounds = array<i64: 4, 8, 16>}, {pipeline_mode = #tpu.pipeline_mode<synchronous>, transform_indices = @transform_5, window_bounds = array<i64: 4, 1, 16>}, {pipeline_mode = #tpu.pipeline_mode<synchronous>, transform_indices = @transform_6, window_bounds = array<i64: 4, 8, 8>}, {pipeline_mode = #tpu.pipeline_mode<synchronous>, transform_indices = @transform_7, window_bounds = array<i64: 4, 1, 8>}, {pipeline_mode = #tpu.pipeline_mode<synchronous>, transform_indices = @transform_8, window_bounds = array<i64: 4, 8, 16>}, {pipeline_mode = #tpu.pipeline_mode<synchronous>, transform_indices = @transform_9, window_bounds = array<i64: 4, 1, 16>}, {pipeline_mode = #tpu.pipeline_mode<synchronous>, transform_indices = @transform_10, window_bounds = array<i64: 1, 32>}, {pipeline_mode = #tpu.pipeline_mode<synchronous>, transform_indices = @transform_11, window_bounds = array<i64: 1, 32>}, {transform_indices = @transform_12, window_bounds = array<i64: 1, 8, 32>}]} {
    %c0 = arith.constant 0 : index
    %c0_0 = arith.constant 0 : index
    %c0_1 = arith.constant 0 : index
    %0 = vector.load %arg1[%c0, %c0_0, %c0_1] : memref<1x8x32xf32, #tpu.memory_space<vmem>>, vector<1x8x32xf32>
    %1 = vector.shape_cast %0 : vector<1x8x32xf32> to vector<8x32xf32>
    %c0_2 = arith.constant 0 : index
    %c0_3 = arith.constant 0 : index
    %2 = vector.load %arg2[%c0_2, %c0_3] : memref<8x32xf32, #tpu.memory_space<vmem>>, vector<8x32xf32>
    %3 = arith.addf %1, %2 : vector<8x32xf32>
    %4 = vector.extract_strided_slice %1 {offsets = [0, 0], sizes = [8, 8], strides = [1, 1]} : vector<8x32xf32> to vector<8x8xf32>
    %5 = vector.extract_strided_slice %3 {offsets = [0, 0], sizes = [8, 8], strides = [1, 1]} : vector<8x32xf32> to vector<8x8xf32>
    %c0_4 = arith.constant 0 : index
    %c0_5 = arith.constant 0 : index
    %c0_6 = arith.constant 0 : index
    %6 = vector.load %arg3[%c0_4, %c0_5, %c0_6] : memref<4x8x8xf32, #tpu.memory_space<vmem>>, vector<1x8x8xf32>
    %7 = vector.shape_cast %6 : vector<1x8x8xf32> to vector<8x8xf32>
    %cst = arith.constant dense<0.000000e+00> : vector<8x8xf32>
    %8 = tpu.matmul %5, %7, %cst {dimension_numbers = #tpu.dot_dimension_numbers<[1], [0], [0], [1], [0, 0, 1, 1], [], []>} : vector<8x8xf32>, vector<8x8xf32>, vector<8x8xf32> -> vector<8x8xf32>
    %c0_7 = arith.constant 0 : index
    %c0_8 = arith.constant 0 : index
    %c0_9 = arith.constant 0 : index
    %9 = vector.load %arg4[%c0_7, %c0_8, %c0_9] : memref<4x1x8xf32, #tpu.memory_space<vmem>>, vector<1x1x8xf32>
    %10 = vector.shape_cast %9 : vector<1x1x8xf32> to vector<1x8xf32>
    %11 = vector.broadcast %10 : vector<1x8xf32> to vector<8x8xf32>
    %12 = arith.addf %8, %11 : vector<8x8xf32>
    %cst_10 = arith.constant 5.000000e-01 : f32
    %13 = vector.broadcast %cst_10 : f32 to vector<8x8xf32>
    %14 = arith.mulf %13, %12 : vector<8x8xf32>
    %cst_11 = arith.constant 0.707106769 : f32
    %15 = vector.broadcast %cst_11 : f32 to vector<8x8xf32>
    %16 = arith.mulf %12, %15 : vector<8x8xf32>
    %17 = math.erf %16 : vector<8x8xf32>
    %cst_12 = arith.constant 1.000000e+00 : f32
    %18 = vector.broadcast %cst_12 : f32 to vector<8x8xf32>
    %19 = arith.addf %18, %17 : vector<8x8xf32>
    %20 = arith.mulf %14, %19 : vector<8x8xf32>
    %c0_13 = arith.constant 0 : index
    %c0_14 = arith.constant 0 : index
    %c0_15 = arith.constant 0 : index
    %21 = vector.load %arg7[%c0_13, %c0_14, %c0_15] : memref<4x8x8xf32, #tpu.memory_space<vmem>>, vector<1x8x8xf32>
    %22 = vector.shape_cast %21 : vector<1x8x8xf32> to vector<8x8xf32>
    %cst_16 = arith.constant dense<0.000000e+00> : vector<8x8xf32>
    %23 = tpu.matmul %5, %22, %cst_16 {dimension_numbers = #tpu.dot_dimension_numbers<[1], [0], [0], [1], [0, 0, 1, 1], [], []>} : vector<8x8xf32>, vector<8x8xf32>, vector<8x8xf32> -> vector<8x8xf32>
    %c0_17 = arith.constant 0 : index
    %c0_18 = arith.constant 0 : index
    %c0_19 = arith.constant 0 : index
    %24 = vector.load %arg8[%c0_17, %c0_18, %c0_19] : memref<4x1x8xf32, #tpu.memory_space<vmem>>, vector<1x1x8xf32>
    %25 = vector.shape_cast %24 : vector<1x1x8xf32> to vector<1x8xf32>
    %26 = vector.broadcast %25 : vector<1x8xf32> to vector<8x8xf32>
    %27 = arith.addf %23, %26 : vector<8x8xf32>
    %cst_20 = arith.constant 5.000000e-01 : f32
    %28 = vector.broadcast %cst_20 : f32 to vector<8x8xf32>
    %29 = arith.mulf %28, %27 : vector<8x8xf32>
    %cst_21 = arith.constant 0.707106769 : f32
    %30 = vector.broadcast %cst_21 : f32 to vector<8x8xf32>
    %31 = arith.mulf %27, %30 : vector<8x8xf32>
    %32 = math.erf %31 : vector<8x8xf32>
    %cst_22 = arith.constant 1.000000e+00 : f32
    %33 = vector.broadcast %cst_22 : f32 to vector<8x8xf32>
    %34 = arith.addf %33, %32 : vector<8x8xf32>
    %35 = arith.mulf %29, %34 : vector<8x8xf32>
    %c0_23 = arith.constant 0 : index
    %c0_24 = arith.constant 0 : index
    %c0_25 = arith.constant 0 : index
    %36 = vector.load %arg5[%c0_23, %c0_24, %c0_25] : memref<4x8x16xf32, #tpu.memory_space<vmem>>, vector<1x8x16xf32>
    %37 = vector.shape_cast %36 : vector<1x8x16xf32> to vector<8x16xf32>
    %c0_26 = arith.constant 0 : index
    %c0_27 = arith.constant 0 : index
    %c0_28 = arith.constant 0 : index
    %38 = vector.load %arg9[%c0_26, %c0_27, %c0_28] : memref<4x8x16xf32, #tpu.memory_space<vmem>>, vector<1x8x16xf32>
    %39 = vector.shape_cast %38 : vector<1x8x16xf32> to vector<8x16xf32>
    %c0_29 = arith.constant 0 : index
    %c0_30 = arith.constant 0 : index
    %c0_31 = arith.constant 0 : index
    %40 = vector.load %arg6[%c0_29, %c0_30, %c0_31] : memref<4x1x16xf32, #tpu.memory_space<vmem>>, vector<1x1x16xf32>
    %41 = vector.shape_cast %40 : vector<1x1x16xf32> to vector<1x16xf32>
    %c0_32 = arith.constant 0 : index
    %c0_33 = arith.constant 0 : index
    %c0_34 = arith.constant 0 : index
    %42 = vector.load %arg10[%c0_32, %c0_33, %c0_34] : memref<4x1x16xf32, #tpu.memory_space<vmem>>, vector<1x1x16xf32>
    %43 = vector.shape_cast %42 : vector<1x1x16xf32> to vector<1x16xf32>
    %cst_35 = arith.constant 0.000000e+00 : f32
    %44 = vector.broadcast %cst_35 : f32 to vector<8x8xf32>
    %cst_36 = arith.constant dense<0.000000e+00> : vector<8x16xf32>
    %45 = tpu.matmul %20, %37, %cst_36 {dimension_numbers = #tpu.dot_dimension_numbers<[1], [0], [0], [1], [0, 0, 1, 1], [], []>} : vector<8x8xf32>, vector<8x16xf32>, vector<8x16xf32> -> vector<8x16xf32>
    %46 = vector.broadcast %41 : vector<1x16xf32> to vector<8x16xf32>
    %47 = arith.addf %45, %46 : vector<8x16xf32>
    %cst_37 = arith.constant dense<0.000000e+00> : vector<8x16xf32>
    %48 = tpu.matmul %35, %39, %cst_37 {dimension_numbers = #tpu.dot_dimension_numbers<[1], [0], [0], [1], [0, 0, 1, 1], [], []>} : vector<8x8xf32>, vector<8x16xf32>, vector<8x16xf32> -> vector<8x16xf32>
    %49 = vector.broadcast %43 : vector<1x16xf32> to vector<8x16xf32>
    %50 = arith.addf %48, %49 : vector<8x16xf32>
    %cst_38 = arith.constant dense<0.000000e+00> : vector<16x8xf32>
    %51 = tpu.matmul %47, %4, %cst_38 {dimension_numbers = #tpu.dot_dimension_numbers<[0], [0], [1], [1], [0, 1, 1, 1], [], []>} : vector<8x16xf32>, vector<8x8xf32>, vector<16x8xf32> -> vector<16x8xf32>
    %cst_39 = arith.constant 5.000000e-01 : f32
    %52 = vector.broadcast %cst_39 : f32 to vector<16x8xf32>
    %53 = arith.mulf %52, %51 : vector<16x8xf32>
    %cst_40 = arith.constant 0.707106769 : f32
    %54 = vector.broadcast %cst_40 : f32 to vector<16x8xf32>
    %55 = arith.mulf %51, %54 : vector<16x8xf32>
    %56 = math.erf %55 : vector<16x8xf32>
    %cst_41 = arith.constant 1.000000e+00 : f32
    %57 = vector.broadcast %cst_41 : f32 to vector<16x8xf32>
    %58 = arith.addf %57, %56 : vector<16x8xf32>
    %59 = arith.mulf %53, %58 : vector<16x8xf32>
    %cst_42 = arith.constant dense<0.000000e+00> : vector<8x8xf32>
    %60 = tpu.matmul %50, %59, %cst_42 {dimension_numbers = #tpu.dot_dimension_numbers<[1], [0], [0], [1], [0, 0, 1, 1], [], []>} : vector<8x16xf32>, vector<16x8xf32>, vector<8x8xf32> -> vector<8x8xf32>
    %61 = arith.addf %44, %60 : vector<8x8xf32>
    %c0_43 = arith.constant 0 : index
    %c0_44 = arith.constant 0 : index
    %62 = vector.load %arg14[%c0_43, %c0_44] : memref<8x32xf32, #tpu.memory_space<vmem>>, vector<8x8xf32>
    tpu.vector_store %arg14[%c0_43, %c0_44], %61 {strides = array<i32>} : memref<8x32xf32, #tpu.memory_space<vmem>>, vector<8x8xf32>,
    %63 = vector.extract_strided_slice %1 {offsets = [0, 8], sizes = [8, 8], strides = [1, 1]} : vector<8x32xf32> to vector<8x8xf32>
    %64 = vector.extract_strided_slice %3 {offsets = [0, 8], sizes = [8, 8], strides = [1, 1]} : vector<8x32xf32> to vector<8x8xf32>
    %c1 = arith.constant 1 : index
    %c0_45 = arith.constant 0 : index
    %c0_46 = arith.constant 0 : index
    %65 = vector.load %arg3[%c1, %c0_45, %c0_46] : memref<4x8x8xf32, #tpu.memory_space<vmem>>, vector<1x8x8xf32>
    %66 = vector.shape_cast %65 : vector<1x8x8xf32> to vector<8x8xf32>
    %cst_47 = arith.constant dense<0.000000e+00> : vector<8x8xf32>
    %67 = tpu.matmul %64, %66, %cst_47 {dimension_numbers = #tpu.dot_dimension_numbers<[1], [0], [0], [1], [0, 0, 1, 1], [], []>} : vector<8x8xf32>, vector<8x8xf32>, vector<8x8xf32> -> vector<8x8xf32>
    %c1_48 = arith.constant 1 : index
    %c0_49 = arith.constant 0 : index
    %c0_50 = arith.constant 0 : index
    %68 = vector.load %arg4[%c1_48, %c0_49, %c0_50] : memref<4x1x8xf32, #tpu.memory_space<vmem>>, vector<1x1x8xf32>
    %69 = vector.shape_cast %68 : vector<1x1x8xf32> to vector<1x8xf32>
    %70 = vector.broadcast %69 : vector<1x8xf32> to vector<8x8xf32>
    %71 = arith.addf %67, %70 : vector<8x8xf32>
    %cst_51 = arith.constant 5.000000e-01 : f32
    %72 = vector.broadcast %cst_51 : f32 to vector<8x8xf32>
    %73 = arith.mulf %72, %71 : vector<8x8xf32>
    %cst_52 = arith.constant 0.707106769 : f32
    %74 = vector.broadcast %cst_52 : f32 to vector<8x8xf32>
    %75 = arith.mulf %71, %74 : vector<8x8xf32>
    %76 = math.erf %75 : vector<8x8xf32>
    %cst_53 = arith.constant 1.000000e+00 : f32
    %77 = vector.broadcast %cst_53 : f32 to vector<8x8xf32>
    %78 = arith.addf %77, %76 : vector<8x8xf32>
    %79 = arith.mulf %73, %78 : vector<8x8xf32>
    %c1_54 = arith.constant 1 : index
    %c0_55 = arith.constant 0 : index
    %c0_56 = arith.constant 0 : index
    %80 = vector.load %arg7[%c1_54, %c0_55, %c0_56] : memref<4x8x8xf32, #tpu.memory_space<vmem>>, vector<1x8x8xf32>
    %81 = vector.shape_cast %80 : vector<1x8x8xf32> to vector<8x8xf32>
    %cst_57 = arith.constant dense<0.000000e+00> : vector<8x8xf32>
    %82 = tpu.matmul %64, %81, %cst_57 {dimension_numbers = #tpu.dot_dimension_numbers<[1], [0], [0], [1], [0, 0, 1, 1], [], []>} : vector<8x8xf32>, vector<8x8xf32>, vector<8x8xf32> -> vector<8x8xf32>
    %c1_58 = arith.constant 1 : index
    %c0_59 = arith.constant 0 : index
    %c0_60 = arith.constant 0 : index
    %83 = vector.load %arg8[%c1_58, %c0_59, %c0_60] : memref<4x1x8xf32, #tpu.memory_space<vmem>>, vector<1x1x8xf32>
    %84 = vector.shape_cast %83 : vector<1x1x8xf32> to vector<1x8xf32>
    %85 = vector.broadcast %84 : vector<1x8xf32> to vector<8x8xf32>
    %86 = arith.addf %82, %85 : vector<8x8xf32>
    %cst_61 = arith.constant 5.000000e-01 : f32
    %87 = vector.broadcast %cst_61 : f32 to vector<8x8xf32>
    %88 = arith.mulf %87, %86 : vector<8x8xf32>
    %cst_62 = arith.constant 0.707106769 : f32
    %89 = vector.broadcast %cst_62 : f32 to vector<8x8xf32>
    %90 = arith.mulf %86, %89 : vector<8x8xf32>
    %91 = math.erf %90 : vector<8x8xf32>
    %cst_63 = arith.constant 1.000000e+00 : f32
    %92 = vector.broadcast %cst_63 : f32 to vector<8x8xf32>
    %93 = arith.addf %92, %91 : vector<8x8xf32>
    %94 = arith.mulf %88, %93 : vector<8x8xf32>
    %c1_64 = arith.constant 1 : index
    %c0_65 = arith.constant 0 : index
    %c0_66 = arith.constant 0 : index
    %95 = vector.load %arg5[%c1_64, %c0_65, %c0_66] : memref<4x8x16xf32, #tpu.memory_space<vmem>>, vector<1x8x16xf32>
    %96 = vector.shape_cast %95 : vector<1x8x16xf32> to vector<8x16xf32>
    %c1_67 = arith.constant 1 : index
    %c0_68 = arith.constant 0 : index
    %c0_69 = arith.constant 0 : index
    %97 = vector.load %arg9[%c1_67, %c0_68, %c0_69] : memref<4x8x16xf32, #tpu.memory_space<vmem>>, vector<1x8x16xf32>
    %98 = vector.shape_cast %97 : vector<1x8x16xf32> to vector<8x16xf32>
    %c1_70 = arith.constant 1 : index
    %c0_71 = arith.constant 0 : index
    %c0_72 = arith.constant 0 : index
    %99 = vector.load %arg6[%c1_70, %c0_71, %c0_72] : memref<4x1x16xf32, #tpu.memory_space<vmem>>, vector<1x1x16xf32>
    %100 = vector.shape_cast %99 : vector<1x1x16xf32> to vector<1x16xf32>
    %c1_73 = arith.constant 1 : index
    %c0_74 = arith.constant 0 : index
    %c0_75 = arith.constant 0 : index
    %101 = vector.load %arg10[%c1_73, %c0_74, %c0_75] : memref<4x1x16xf32, #tpu.memory_space<vmem>>, vector<1x1x16xf32>
    %102 = vector.shape_cast %101 : vector<1x1x16xf32> to vector<1x16xf32>
    %cst_76 = arith.constant 0.000000e+00 : f32
    %103 = vector.broadcast %cst_76 : f32 to vector<8x8xf32>
    %cst_77 = arith.constant dense<0.000000e+00> : vector<8x16xf32>
    %104 = tpu.matmul %79, %96, %cst_77 {dimension_numbers = #tpu.dot_dimension_numbers<[1], [0], [0], [1], [0, 0, 1, 1], [], []>} : vector<8x8xf32>, vector<8x16xf32>, vector<8x16xf32> -> vector<8x16xf32>
    %105 = vector.broadcast %100 : vector<1x16xf32> to vector<8x16xf32>
    %106 = arith.addf %104, %105 : vector<8x16xf32>
    %cst_78 = arith.constant dense<0.000000e+00> : vector<8x16xf32>
    %107 = tpu.matmul %94, %98, %cst_78 {dimension_numbers = #tpu.dot_dimension_numbers<[1], [0], [0], [1], [0, 0, 1, 1], [], []>} : vector<8x8xf32>, vector<8x16xf32>, vector<8x16xf32> -> vector<8x16xf32>
    %108 = vector.broadcast %102 : vector<1x16xf32> to vector<8x16xf32>
    %109 = arith.addf %107, %108 : vector<8x16xf32>
    %cst_79 = arith.constant dense<0.000000e+00> : vector<16x8xf32>
    %110 = tpu.matmul %106, %63, %cst_79 {dimension_numbers = #tpu.dot_dimension_numbers<[0], [0], [1], [1], [0, 1, 1, 1], [], []>} : vector<8x16xf32>, vector<8x8xf32>, vector<16x8xf32> -> vector<16x8xf32>
    %cst_80 = arith.constant 5.000000e-01 : f32
    %111 = vector.broadcast %cst_80 : f32 to vector<16x8xf32>
    %112 = arith.mulf %111, %110 : vector<16x8xf32>
    %cst_81 = arith.constant 0.707106769 : f32
    %113 = vector.broadcast %cst_81 : f32 to vector<16x8xf32>
    %114 = arith.mulf %110, %113 : vector<16x8xf32>
    %115 = math.erf %114 : vector<16x8xf32>
    %cst_82 = arith.constant 1.000000e+00 : f32
    %116 = vector.broadcast %cst_82 : f32 to vector<16x8xf32>
    %117 = arith.addf %116, %115 : vector<16x8xf32>
    %118 = arith.mulf %112, %117 : vector<16x8xf32>
    %cst_83 = arith.constant dense<0.000000e+00> : vector<8x8xf32>
    %119 = tpu.matmul %109, %118, %cst_83 {dimension_numbers = #tpu.dot_dimension_numbers<[1], [0], [0], [1], [0, 0, 1, 1], [], []>} : vector<8x16xf32>, vector<16x8xf32>, vector<8x8xf32> -> vector<8x8xf32>
    %120 = arith.addf %103, %119 : vector<8x8xf32>
    %c0_84 = arith.constant 0 : index
    %c8 = arith.constant 8 : index
    %121 = vector.load %arg14[%c0_84, %c8] : memref<8x32xf32, #tpu.memory_space<vmem>>, vector<8x8xf32>
    tpu.vector_store %arg14[%c0_84, %c8], %120 {strides = array<i32>} : memref<8x32xf32, #tpu.memory_space<vmem>>, vector<8x8xf32>,
    %122 = vector.extract_strided_slice %1 {offsets = [0, 16], sizes = [8, 8], strides = [1, 1]} : vector<8x32xf32> to vector<8x8xf32>
    %123 = vector.extract_strided_slice %3 {offsets = [0, 16], sizes = [8, 8], strides = [1, 1]} : vector<8x32xf32> to vector<8x8xf32>
    %c2 = arith.constant 2 : index
    %c0_85 = arith.constant 0 : index
    %c0_86 = arith.constant 0 : index
    %124 = vector.load %arg3[%c2, %c0_85, %c0_86] : memref<4x8x8xf32, #tpu.memory_space<vmem>>, vector<1x8x8xf32>
    %125 = vector.shape_cast %124 : vector<1x8x8xf32> to vector<8x8xf32>
    %cst_87 = arith.constant dense<0.000000e+00> : vector<8x8xf32>
    %126 = tpu.matmul %123, %125, %cst_87 {dimension_numbers = #tpu.dot_dimension_numbers<[1], [0], [0], [1], [0, 0, 1, 1], [], []>} : vector<8x8xf32>, vector<8x8xf32>, vector<8x8xf32> -> vector<8x8xf32>
    %c2_88 = arith.constant 2 : index
    %c0_89 = arith.constant 0 : index
    %c0_90 = arith.constant 0 : index
    %127 = vector.load %arg4[%c2_88, %c0_89, %c0_90] : memref<4x1x8xf32, #tpu.memory_space<vmem>>, vector<1x1x8xf32>
    %128 = vector.shape_cast %127 : vector<1x1x8xf32> to vector<1x8xf32>
    %129 = vector.broadcast %128 : vector<1x8xf32> to vector<8x8xf32>
    %130 = arith.addf %126, %129 : vector<8x8xf32>
    %cst_91 = arith.constant 5.000000e-01 : f32
    %131 = vector.broadcast %cst_91 : f32 to vector<8x8xf32>
    %132 = arith.mulf %131, %130 : vector<8x8xf32>
    %cst_92 = arith.constant 0.707106769 : f32
    %133 = vector.broadcast %cst_92 : f32 to vector<8x8xf32>
    %134 = arith.mulf %130, %133 : vector<8x8xf32>
    %135 = math.erf %134 : vector<8x8xf32>
    %cst_93 = arith.constant 1.000000e+00 : f32
    %136 = vector.broadcast %cst_93 : f32 to vector<8x8xf32>
    %137 = arith.addf %136, %135 : vector<8x8xf32>
    %138 = arith.mulf %132, %137 : vector<8x8xf32>
    %c2_94 = arith.constant 2 : index
    %c0_95 = arith.constant 0 : index
    %c0_96 = arith.constant 0 : index
    %139 = vector.load %arg7[%c2_94, %c0_95, %c0_96] : memref<4x8x8xf32, #tpu.memory_space<vmem>>, vector<1x8x8xf32>
    %140 = vector.shape_cast %139 : vector<1x8x8xf32> to vector<8x8xf32>
    %cst_97 = arith.constant dense<0.000000e+00> : vector<8x8xf32>
    %141 = tpu.matmul %123, %140, %cst_97 {dimension_numbers = #tpu.dot_dimension_numbers<[1], [0], [0], [1], [0, 0, 1, 1], [], []>} : vector<8x8xf32>, vector<8x8xf32>, vector<8x8xf32> -> vector<8x8xf32>
    %c2_98 = arith.constant 2 : index
    %c0_99 = arith.constant 0 : index
    %c0_100 = arith.constant 0 : index
    %142 = vector.load %arg8[%c2_98, %c0_99, %c0_100] : memref<4x1x8xf32, #tpu.memory_space<vmem>>, vector<1x1x8xf32>
    %143 = vector.shape_cast %142 : vector<1x1x8xf32> to vector<1x8xf32>
    %144 = vector.broadcast %143 : vector<1x8xf32> to vector<8x8xf32>
    %145 = arith.addf %141, %144 : vector<8x8xf32>
    %cst_101 = arith.constant 5.000000e-01 : f32
    %146 = vector.broadcast %cst_101 : f32 to vector<8x8xf32>
    %147 = arith.mulf %146, %145 : vector<8x8xf32>
    %cst_102 = arith.constant 0.707106769 : f32
    %148 = vector.broadcast %cst_102 : f32 to vector<8x8xf32>
    %149 = arith.mulf %145, %148 : vector<8x8xf32>
    %150 = math.erf %149 : vector<8x8xf32>
    %cst_103 = arith.constant 1.000000e+00 : f32
    %151 = vector.broadcast %cst_103 : f32 to vector<8x8xf32>
    %152 = arith.addf %151, %150 : vector<8x8xf32>
    %153 = arith.mulf %147, %152 : vector<8x8xf32>
    %c2_104 = arith.constant 2 : index
    %c0_105 = arith.constant 0 : index
    %c0_106 = arith.constant 0 : index
    %154 = vector.load %arg5[%c2_104, %c0_105, %c0_106] : memref<4x8x16xf32, #tpu.memory_space<vmem>>, vector<1x8x16xf32>
    %155 = vector.shape_cast %154 : vector<1x8x16xf32> to vector<8x16xf32>
    %c2_107 = arith.constant 2 : index
    %c0_108 = arith.constant 0 : index
    %c0_109 = arith.constant 0 : index
    %156 = vector.load %arg9[%c2_107, %c0_108, %c0_109] : memref<4x8x16xf32, #tpu.memory_space<vmem>>, vector<1x8x16xf32>
    %157 = vector.shape_cast %156 : vector<1x8x16xf32> to vector<8x16xf32>
    %c2_110 = arith.constant 2 : index
    %c0_111 = arith.constant 0 : index
    %c0_112 = arith.constant 0 : index
    %158 = vector.load %arg6[%c2_110, %c0_111, %c0_112] : memref<4x1x16xf32, #tpu.memory_space<vmem>>, vector<1x1x16xf32>
    %159 = vector.shape_cast %158 : vector<1x1x16xf32> to vector<1x16xf32>
    %c2_113 = arith.constant 2 : index
    %c0_114 = arith.constant 0 : index
    %c0_115 = arith.constant 0 : index
    %160 = vector.load %arg10[%c2_113, %c0_114, %c0_115] : memref<4x1x16xf32, #tpu.memory_space<vmem>>, vector<1x1x16xf32>
    %161 = vector.shape_cast %160 : vector<1x1x16xf32> to vector<1x16xf32>
    %cst_116 = arith.constant 0.000000e+00 : f32
    %162 = vector.broadcast %cst_116 : f32 to vector<8x8xf32>
    %cst_117 = arith.constant dense<0.000000e+00> : vector<8x16xf32>
    %163 = tpu.matmul %138, %155, %cst_117 {dimension_numbers = #tpu.dot_dimension_numbers<[1], [0], [0], [1], [0, 0, 1, 1], [], []>} : vector<8x8xf32>, vector<8x16xf32>, vector<8x16xf32> -> vector<8x16xf32>
    %164 = vector.broadcast %159 : vector<1x16xf32> to vector<8x16xf32>
    %165 = arith.addf %163, %164 : vector<8x16xf32>
    %cst_118 = arith.constant dense<0.000000e+00> : vector<8x16xf32>
    %166 = tpu.matmul %153, %157, %cst_118 {dimension_numbers = #tpu.dot_dimension_numbers<[1], [0], [0], [1], [0, 0, 1, 1], [], []>} : vector<8x8xf32>, vector<8x16xf32>, vector<8x16xf32> -> vector<8x16xf32>
    %167 = vector.broadcast %161 : vector<1x16xf32> to vector<8x16xf32>
    %168 = arith.addf %166, %167 : vector<8x16xf32>
    %cst_119 = arith.constant dense<0.000000e+00> : vector<16x8xf32>
    %169 = tpu.matmul %165, %122, %cst_119 {dimension_numbers = #tpu.dot_dimension_numbers<[0], [0], [1], [1], [0, 1, 1, 1], [], []>} : vector<8x16xf32>, vector<8x8xf32>, vector<16x8xf32> -> vector<16x8xf32>
    %cst_120 = arith.constant 5.000000e-01 : f32
    %170 = vector.broadcast %cst_120 : f32 to vector<16x8xf32>
    %171 = arith.mulf %170, %169 : vector<16x8xf32>
    %cst_121 = arith.constant 0.707106769 : f32
    %172 = vector.broadcast %cst_121 : f32 to vector<16x8xf32>
    %173 = arith.mulf %169, %172 : vector<16x8xf32>
    %174 = math.erf %173 : vector<16x8xf32>
    %cst_122 = arith.constant 1.000000e+00 : f32
    %175 = vector.broadcast %cst_122 : f32 to vector<16x8xf32>
    %176 = arith.addf %175, %174 : vector<16x8xf32>
    %177 = arith.mulf %171, %176 : vector<16x8xf32>
    %cst_123 = arith.constant dense<0.000000e+00> : vector<8x8xf32>
    %178 = tpu.matmul %168, %177, %cst_123 {dimension_numbers = #tpu.dot_dimension_numbers<[1], [0], [0], [1], [0, 0, 1, 1], [], []>} : vector<8x16xf32>, vector<16x8xf32>, vector<8x8xf32> -> vector<8x8xf32>
    %179 = arith.addf %162, %178 : vector<8x8xf32>
    %c0_124 = arith.constant 0 : index
    %c16 = arith.constant 16 : index
    %180 = vector.load %arg14[%c0_124, %c16] : memref<8x32xf32, #tpu.memory_space<vmem>>, vector<8x8xf32>
    tpu.vector_store %arg14[%c0_124, %c16], %179 {strides = array<i32>} : memref<8x32xf32, #tpu.memory_space<vmem>>, vector<8x8xf32>,
    %181 = vector.extract_strided_slice %1 {offsets = [0, 24], sizes = [8, 8], strides = [1, 1]} : vector<8x32xf32> to vector<8x8xf32>
    %182 = vector.extract_strided_slice %3 {offsets = [0, 24], sizes = [8, 8], strides = [1, 1]} : vector<8x32xf32> to vector<8x8xf32>
    %c3 = arith.constant 3 : index
    %c0_125 = arith.constant 0 : index
    %c0_126 = arith.constant 0 : index
    %183 = vector.load %arg3[%c3, %c0_125, %c0_126] : memref<4x8x8xf32, #tpu.memory_space<vmem>>, vector<1x8x8xf32>
    %184 = vector.shape_cast %183 : vector<1x8x8xf32> to vector<8x8xf32>
    %cst_127 = arith.constant dense<0.000000e+00> : vector<8x8xf32>
    %185 = tpu.matmul %182, %184, %cst_127 {dimension_numbers = #tpu.dot_dimension_numbers<[1], [0], [0], [1], [0, 0, 1, 1], [], []>} : vector<8x8xf32>, vector<8x8xf32>, vector<8x8xf32> -> vector<8x8xf32>
    %c3_128 = arith.constant 3 : index
    %c0_129 = arith.constant 0 : index
    %c0_130 = arith.constant 0 : index
    %186 = vector.load %arg4[%c3_128, %c0_129, %c0_130] : memref<4x1x8xf32, #tpu.memory_space<vmem>>, vector<1x1x8xf32>
    %187 = vector.shape_cast %186 : vector<1x1x8xf32> to vector<1x8xf32>
    %188 = vector.broadcast %187 : vector<1x8xf32> to vector<8x8xf32>
    %189 = arith.addf %185, %188 : vector<8x8xf32>
    %cst_131 = arith.constant 5.000000e-01 : f32
    %190 = vector.broadcast %cst_131 : f32 to vector<8x8xf32>
    %191 = arith.mulf %190, %189 : vector<8x8xf32>
    %cst_132 = arith.constant 0.707106769 : f32
    %192 = vector.broadcast %cst_132 : f32 to vector<8x8xf32>
    %193 = arith.mulf %189, %192 : vector<8x8xf32>
    %194 = math.erf %193 : vector<8x8xf32>
    %cst_133 = arith.constant 1.000000e+00 : f32
    %195 = vector.broadcast %cst_133 : f32 to vector<8x8xf32>
    %196 = arith.addf %195, %194 : vector<8x8xf32>
    %197 = arith.mulf %191, %196 : vector<8x8xf32>
    %c3_134 = arith.constant 3 : index
    %c0_135 = arith.constant 0 : index
    %c0_136 = arith.constant 0 : index
    %198 = vector.load %arg7[%c3_134, %c0_135, %c0_136] : memref<4x8x8xf32, #tpu.memory_space<vmem>>, vector<1x8x8xf32>
    %199 = vector.shape_cast %198 : vector<1x8x8xf32> to vector<8x8xf32>
    %cst_137 = arith.constant dense<0.000000e+00> : vector<8x8xf32>
    %200 = tpu.matmul %182, %199, %cst_137 {dimension_numbers = #tpu.dot_dimension_numbers<[1], [0], [0], [1], [0, 0, 1, 1], [], []>} : vector<8x8xf32>, vector<8x8xf32>, vector<8x8xf32> -> vector<8x8xf32>
    %c3_138 = arith.constant 3 : index
    %c0_139 = arith.constant 0 : index
    %c0_140 = arith.constant 0 : index
    %201 = vector.load %arg8[%c3_138, %c0_139, %c0_140] : memref<4x1x8xf32, #tpu.memory_space<vmem>>, vector<1x1x8xf32>
    %202 = vector.shape_cast %201 : vector<1x1x8xf32> to vector<1x8xf32>
    %203 = vector.broadcast %202 : vector<1x8xf32> to vector<8x8xf32>
    %204 = arith.addf %200, %203 : vector<8x8xf32>
    %cst_141 = arith.constant 5.000000e-01 : f32
    %205 = vector.broadcast %cst_141 : f32 to vector<8x8xf32>
    %206 = arith.mulf %205, %204 : vector<8x8xf32>
    %cst_142 = arith.constant 0.707106769 : f32
    %207 = vector.broadcast %cst_142 : f32 to vector<8x8xf32>
    %208 = arith.mulf %204, %207 : vector<8x8xf32>
    %209 = math.erf %208 : vector<8x8xf32>
    %cst_143 = arith.constant 1.000000e+00 : f32
    %210 = vector.broadcast %cst_143 : f32 to vector<8x8xf32>
    %211 = arith.addf %210, %209 : vector<8x8xf32>
    %212 = arith.mulf %206, %211 : vector<8x8xf32>
    %c3_144 = arith.constant 3 : index
    %c0_145 = arith.constant 0 : index
    %c0_146 = arith.constant 0 : index
    %213 = vector.load %arg5[%c3_144, %c0_145, %c0_146] : memref<4x8x16xf32, #tpu.memory_space<vmem>>, vector<1x8x16xf32>
    %214 = vector.shape_cast %213 : vector<1x8x16xf32> to vector<8x16xf32>
    %c3_147 = arith.constant 3 : index
    %c0_148 = arith.constant 0 : index
    %c0_149 = arith.constant 0 : index
    %215 = vector.load %arg9[%c3_147, %c0_148, %c0_149] : memref<4x8x16xf32, #tpu.memory_space<vmem>>, vector<1x8x16xf32>
    %216 = vector.shape_cast %215 : vector<1x8x16xf32> to vector<8x16xf32>
    %c3_150 = arith.constant 3 : index
    %c0_151 = arith.constant 0 : index
    %c0_152 = arith.constant 0 : index
    %217 = vector.load %arg6[%c3_150, %c0_151, %c0_152] : memref<4x1x16xf32, #tpu.memory_space<vmem>>, vector<1x1x16xf32>
    %218 = vector.shape_cast %217 : vector<1x1x16xf32> to vector<1x16xf32>
    %c3_153 = arith.constant 3 : index
    %c0_154 = arith.constant 0 : index
    %c0_155 = arith.constant 0 : index
    %219 = vector.load %arg10[%c3_153, %c0_154, %c0_155] : memref<4x1x16xf32, #tpu.memory_space<vmem>>, vector<1x1x16xf32>
    %220 = vector.shape_cast %219 : vector<1x1x16xf32> to vector<1x16xf32>
    %cst_156 = arith.constant 0.000000e+00 : f32
    %221 = vector.broadcast %cst_156 : f32 to vector<8x8xf32>
    %cst_157 = arith.constant dense<0.000000e+00> : vector<8x16xf32>
    %222 = tpu.matmul %197, %214, %cst_157 {dimension_numbers = #tpu.dot_dimension_numbers<[1], [0], [0], [1], [0, 0, 1, 1], [], []>} : vector<8x8xf32>, vector<8x16xf32>, vector<8x16xf32> -> vector<8x16xf32>
    %223 = vector.broadcast %218 : vector<1x16xf32> to vector<8x16xf32>
    %224 = arith.addf %222, %223 : vector<8x16xf32>
    %cst_158 = arith.constant dense<0.000000e+00> : vector<8x16xf32>
    %225 = tpu.matmul %212, %216, %cst_158 {dimension_numbers = #tpu.dot_dimension_numbers<[1], [0], [0], [1], [0, 0, 1, 1], [], []>} : vector<8x8xf32>, vector<8x16xf32>, vector<8x16xf32> -> vector<8x16xf32>
    %226 = vector.broadcast %220 : vector<1x16xf32> to vector<8x16xf32>
    %227 = arith.addf %225, %226 : vector<8x16xf32>
    %cst_159 = arith.constant dense<0.000000e+00> : vector<16x8xf32>
    %228 = tpu.matmul %224, %181, %cst_159 {dimension_numbers = #tpu.dot_dimension_numbers<[0], [0], [1], [1], [0, 1, 1, 1], [], []>} : vector<8x16xf32>, vector<8x8xf32>, vector<16x8xf32> -> vector<16x8xf32>
    %cst_160 = arith.constant 5.000000e-01 : f32
    %229 = vector.broadcast %cst_160 : f32 to vector<16x8xf32>
    %230 = arith.mulf %229, %228 : vector<16x8xf32>
    %cst_161 = arith.constant 0.707106769 : f32
    %231 = vector.broadcast %cst_161 : f32 to vector<16x8xf32>
    %232 = arith.mulf %228, %231 : vector<16x8xf32>
    %233 = math.erf %232 : vector<16x8xf32>
    %cst_162 = arith.constant 1.000000e+00 : f32
    %234 = vector.broadcast %cst_162 : f32 to vector<16x8xf32>
    %235 = arith.addf %234, %233 : vector<16x8xf32>
    %236 = arith.mulf %230, %235 : vector<16x8xf32>
    %cst_163 = arith.constant dense<0.000000e+00> : vector<8x8xf32>
    %237 = tpu.matmul %227, %236, %cst_163 {dimension_numbers = #tpu.dot_dimension_numbers<[1], [0], [0], [1], [0, 0, 1, 1], [], []>} : vector<8x16xf32>, vector<16x8xf32>, vector<8x8xf32> -> vector<8x8xf32>
    %238 = arith.addf %221, %237 : vector<8x8xf32>
    %c0_164 = arith.constant 0 : index
    %c24 = arith.constant 24 : index
    %239 = vector.load %arg14[%c0_164, %c24] : memref<8x32xf32, #tpu.memory_space<vmem>>, vector<8x8xf32>
    tpu.vector_store %arg14[%c0_164, %c24], %238 {strides = array<i32>} : memref<8x32xf32, #tpu.memory_space<vmem>>, vector<8x8xf32>,
    %c0_165 = arith.constant 0 : index
    %c0_166 = arith.constant 0 : index
    %240 = vector.load %arg14[%c0_165, %c0_166] : memref<8x32xf32, #tpu.memory_space<vmem>>, vector<8x32xf32>
    %cst_167 = arith.constant dense<0.000000e+00> : vector<8xf32>
    %241 = vector.multi_reduction <add>, %240, %cst_167 [1] : vector<8x32xf32> to vector<8xf32>
    %242 = vector.shape_cast %241 : vector<8xf32> to vector<8x1xf32>
    %cst_168 = arith.constant 3.200000e+01 : f32
    %243 = vector.broadcast %cst_168 : f32 to vector<8x1xf32>
    %244 = arith.divf %242, %243 : vector<8x1xf32>
    %245 = vector.broadcast %244 : vector<8x1xf32> to vector<8x32xf32>
    %246 = arith.subf %240, %245 : vector<8x32xf32>
    %247 = arith.mulf %246, %246 : vector<8x32xf32>
    %cst_169 = arith.constant dense<0.000000e+00> : vector<8xf32>
    %248 = vector.multi_reduction <add>, %247, %cst_169 [1] : vector<8x32xf32> to vector<8xf32>
    %249 = vector.shape_cast %248 : vector<8xf32> to vector<8x1xf32>
    %cst_170 = arith.constant 3.200000e+01 : f32
    %250 = vector.broadcast %cst_170 : f32 to vector<8x1xf32>
    %251 = arith.divf %249, %250 : vector<8x1xf32>
    %cst_171 = arith.constant 9.99999974E-6 : f32
    %252 = vector.broadcast %cst_171 : f32 to vector<8x1xf32>
    %253 = arith.addf %251, %252 : vector<8x1xf32>
    %254 = math.rsqrt %253 : vector<8x1xf32>
    %255 = vector.broadcast %254 : vector<8x1xf32> to vector<8x32xf32>
    %256 = arith.mulf %246, %255 : vector<8x32xf32>
    %c0_172 = arith.constant 0 : index
    %c0_173 = arith.constant 0 : index
    %257 = vector.load %arg11[%c0_172, %c0_173] : memref<1x32xf32, #tpu.memory_space<vmem>>, vector<1x32xf32>
    %258 = vector.broadcast %257 : vector<1x32xf32> to vector<8x32xf32>
    %259 = arith.mulf %256, %258 : vector<8x32xf32>
    %c0_174 = arith.constant 0 : index
    %c0_175 = arith.constant 0 : index
    %260 = vector.load %arg12[%c0_174, %c0_175] : memref<1x32xf32, #tpu.memory_space<vmem>>, vector<1x32xf32>
    %261 = vector.broadcast %260 : vector<1x32xf32> to vector<8x32xf32>
    %262 = arith.addf %259, %261 : vector<8x32xf32>
    %c0_176 = arith.constant 0 : index
    %c0_177 = arith.constant 0 : index
    %c0_178 = arith.constant 0 : index
    %263 = vector.load %arg13[%c0_176, %c0_177, %c0_178] : memref<1x8x32xf32, #tpu.memory_space<vmem>>, vector<1x8x32xf32>
    %264 = vector.shape_cast %263 : vector<1x8x32xf32> to vector<8x32xf32>
    %265 = vector.shape_cast %262 : vector<8x32xf32> to vector<1x8x32xf32>
    tpu.vector_store %arg13[%c0_176, %c0_177, %c0_178], %265 {strides = array<i32>} : memref<1x8x32xf32, #tpu.memory_space<vmem>>, vector<1x8x32xf32>,
    return
  }
  func.func @transform_0(%arg0: i32) -> (i32, i32, i32) {
    %c0_i32 = arith.constant 0 : i32
    %c0_i32_0 = arith.constant 0 : i32
    %c0_i32_1 = arith.constant 0 : i32
    return %arg0, %c0_i32, %c0_i32_0 : i32, i32, i32
  }
  func.func @transform_1(%arg0: i32) -> (i32, i32) {
    %c0_i32 = arith.constant 0 : i32
    %c0_i32_0 = arith.constant 0 : i32
    %c0_i32_1 = arith.constant 0 : i32
    return %c0_i32, %c0_i32_0 : i32, i32
  }
  func.func @transform_2(%arg0: i32) -> (i32, i32, i32) {
    %c0_i32 = arith.constant 0 : i32
    %c0_i32_0 = arith.constant 0 : i32
    %c0_i32_1 = arith.constant 0 : i32
    %c0_i32_2 = arith.constant 0 : i32
    return %c0_i32, %c0_i32_0, %c0_i32_1 : i32, i32, i32
  }
  func.func @transform_3(%arg0: i32) -> (i32, i32, i32) {
    %c0_i32 = arith.constant 0 : i32
    %c0_i32_0 = arith.constant 0 : i32
    %c0_i32_1 = arith.constant 0 : i32
    %c0_i32_2 = arith.constant 0 : i32
    return %c0_i32, %c0_i32_0, %c0_i32_1 : i32, i32, i32
  }
  func.func @transform_4(%arg0: i32) -> (i32, i32, i32) {
    %c0_i32 = arith.constant 0 : i32
    %c0_i32_0 = arith.constant 0 : i32
    %c0_i32_1 = arith.constant 0 : i32
    %c0_i32_2 = arith.constant 0 : i32
    return %c0_i32, %c0_i32_0, %c0_i32_1 : i32, i32, i32
  }
  func.func @transform_5(%arg0: i32) -> (i32, i32, i32) {
    %c0_i32 = arith.constant 0 : i32
    %c0_i32_0 = arith.constant 0 : i32
    %c0_i32_1 = arith.constant 0 : i32
    %c0_i32_2 = arith.constant 0 : i32
    return %c0_i32, %c0_i32_0, %c0_i32_1 : i32, i32, i32
  }
  func.func @transform_6(%arg0: i32) -> (i32, i32, i32) {
    %c0_i32 = arith.constant 0 : i32
    %c0_i32_0 = arith.constant 0 : i32
    %c0_i32_1 = arith.constant 0 : i32
    %c0_i32_2 = arith.constant 0 : i32
    return %c0_i32, %c0_i32_0, %c0_i32_1 : i32, i32, i32
  }
  func.func @transform_7(%arg0: i32) -> (i32, i32, i32) {
    %c0_i32 = arith.constant 0 : i32
    %c0_i32_0 = arith.constant 0 : i32
    %c0_i32_1 = arith.constant 0 : i32
    %c0_i32_2 = arith.constant 0 : i32
    return %c0_i32, %c0_i32_0, %c0_i32_1 : i32, i32, i32
  }
  func.func @transform_8(%arg0: i32) -> (i32, i32, i32) {
    %c0_i32 = arith.constant 0 : i32
    %c0_i32_0 = arith.constant 0 : i32
    %c0_i32_1 = arith.constant 0 : i32
    %c0_i32_2 = arith.constant 0 : i32
    return %c0_i32, %c0_i32_0, %c0_i32_1 : i32, i32, i32
  }
  func.func @transform_9(%arg0: i32) -> (i32, i32, i32) {
    %c0_i32 = arith.constant 0 : i32
    %c0_i32_0 = arith.constant 0 : i32
    %c0_i32_1 = arith.constant 0 : i32
    %c0_i32_2 = arith.constant 0 : i32
    return %c0_i32, %c0_i32_0, %c0_i32_1 : i32, i32, i32
  }
  func.func @transform_10(%arg0: i32) -> (i32, i32) {
    %c0_i32 = arith.constant 0 : i32
    %c0_i32_0 = arith.constant 0 : i32
    %c0_i32_1 = arith.constant 0 : i32
    return %c0_i32, %c0_i32_0 : i32, i32
  }
  func.func @transform_11(%arg0: i32) -> (i32, i32) {
    %c0_i32 = arith.constant 0 : i32
    %c0_i32_0 = arith.constant 0 : i32
    %c0_i32_1 = arith.constant 0 : i32
    return %c0_i32, %c0_i32_0 : i32, i32
  }
  func.func @transform_12(%arg0: i32) -> (i32, i32, i32) {
    %c0_i32 = arith.constant 0 : i32
    %c0_i32_0 = arith.constant 0 : i32
    %c0_i32_1 = arith.constant 0 : i32
    return %arg0, %c0_i32, %c0_i32_0 : i32, i32, i32
  }
}

</mosaic_0001>

<bundles_post_ra>
// kernel: tpu_custom_call.1
= control target key start
LH: loop header
LB: loop body
LE: loop exit
PB: predicated region body
PF: predicated region fallthrough
CT: control target
= control target key end

     0   :  { %s3946_s0 = inlined_call_operand.hbm [shape: f32[2,8,32], index: 0, kind: input, shape index: {}]   ;;  %s3947_s1 = inlined_call_operand.hbm [shape: f32[8,32], index: 1, kind: input, shape index: {}]   ;;  %s3948_s2 = inlined_call_operand.hbm [shape: f32[4,8,8], index: 2, kind: input, shape index: {}]   ;;  %s3949_s3 = inlined_call_operand.vmem [shape: f32[4,1,8], index: 3, kind: input, shape index: {}]   ;;  %s3950_s4 = inlined_call_operand.hbm [shape: f32[4,8,16], index: 4, kind: input, shape index: {}]   ;;  %s3951_s5 = inlined_call_operand.vmem [shape: f32[4,1,16], index: 5, kind: input, shape index: {}]   ;;  %s3952_s6 = inlined_call_operand.hbm [shape: f32[4,8,8], index: 6, kind: input, shape index: {}]   ;;  %s3953_s7 = inlined_call_operand.vmem [shape: f32[4,1,8], index: 7, kind: input, shape index: {}]   ;;  %s3954_s8 = inlined_call_operand.hbm [shape: f32[4,8,16], index: 8, kind: input, shape index: {}]   ;;  %s3955_s9 = inlined_call_operand.vmem [shape: f32[4,1,16], index: 9, kind: input, shape index: {}]   ;;  %s3956_s10 = inlined_call_operand.vmem [shape: f32[1,32], index: 10, kind: input, shape index: {}]   ;;  %s3957_s11 = inlined_call_operand.vmem [shape: f32[1,32], index: 11, kind: input, shape index: {}]   ;;  %s3958_s12 = inlined_call_operand.hbm [shape: f32[2,8,32], index: 12, kind: output, shape index: {}]  }
   0x1   :  { %3964 = sst [smem:[#allocation22_spill]] %s3947_s1 }
   0x2   :  { %3965 = sst [smem:[#allocation23_spill]] %s3948_s2 }
   0x3   :  { %3966 = sst [smem:[#allocation24_spill]] %s3950_s4 }
   0x4   :  { %3967 = sst [smem:[#allocation25_spill]] %s3952_s6 }
   0x5   :  { %3968 = sst [smem:[#allocation26_spill]] %s3954_s8 }
   0x6   :  { %17 = vsyncpa [#allocation4], 0 }
   0x7   :  { %19 = vsyncpa [#allocation4 + $0x1], 0 }
   0x8   :  { %20 = vsyncpa [#allocation7], 0 }
   0x9   :  { %21 = vsyncpa [#allocation10], 0 }
   0xa   :  { %22 = vsyncpa [#allocation13], 0 }
   0xb   :  { %23 = vsyncpa [#allocation5], 0 }
   0xc   :  { %25 = vsyncpa [#allocation5 + $0x1], 0  ;;  %s3557_s21 = smov 0   ;;  %s3559_s22 = smov 0  }
   0xd   :  { %s3561_s23 = smov 0   ;;  %s3563_s24 = smov 0  }
   0xe LB: > { %3969 = sst [smem:[#allocation20_spill]] %s3469_s23  ;;  %s3475_s25 = smov [#allocation6]   ;;  %s3473_s24 = sphi %s3563_s24, %s3998_s24   ;;  %s3469_s23 = sphi %s3561_s23, %s3995_s23   ;;  %s3465_s22 = sphi %s3559_s22, %s3997_s22   ;;  %s3461_s21 = sphi %s3557_s21, %s3996_s21  }
   0xf   : > { %s332_s26 = sshll.u32 %s3475_s25, 4  ;;  %s3578_s27 = sadd.s32 4294967295, %s3473_s24   ;;  %s333_s26 = int_to_ptr.vmem [resolvable:$true] %s332_s26 }
  0x10   : > { %p2835_p0 = scmp.ge.s32.totalorder %s3473_s24, 1  ;;  %p3959_p1 = scmp.eq.s32.totalorder %s3578_s27, 0 }
  0x11   : > { %p319_p2 = scmp.lt.s32.totalorder %s3473_s24, 3  ;;  %s3476_s29 = smov [#allocation9]  }
  0x12   : > { %s358_s30 = sshll.u32 %s3476_s29, 4  ;;  %s3477_s14 = smov [#allocation8]   ;;  %s3596_s30 = int_to_ptr.vmem [resolvable:$true] %s358_s30 }
  0x13   : > { %p3583_p3 = pnand %p2835_p0, %p319_p2  ;;  %s342_s15 = sshll.u32 %s3477_s14, 4  ;;  %s3598_s15 = int_to_ptr.vmem [resolvable:$true] %s342_s15 }
  0x14   : > { %s3250_s17 = scalar_lea.vmem %s333_s26, 128  ;;  %p3258_p11 = scmp.lt.s32.totalorder %s333_s26, %s333_s26 }
  0x15   : > { %s3970_s28 = scalar_select %p3583_p3, 1, 0 }
  0x16   : > { %p3122_p5 = pneg %p3583_p3  ;;  %p3251_p8 = scmp.ne.s32.totalorder %s333_s26, %s3250_s17 }
  0x17   : > { %p3259_p12 = scmp.lt.s32.totalorder %s3250_s17, %s3250_s17 }
  0x18   : > { %p3592_p6 = pnand %p3122_p5, %p3959_p1 }
  0x19   : > { %p3260_p13 = por %p3259_p12, %p3258_p11 }
  0x1a   : > { %p3602_p7 = pneg %p3592_p6 }
  0x1c   : > { %p3253_p9 = pnand %p3251_p8, %p3602_p7 }
  0x1e   : > { %p3254_p10 = pneg %p3253_p9 }
  0x20   : > { %p3261_p0 = pnand %p3260_p13, %p3254_p10 }
  0x22   : > { %3264 = shalt.err (!%p3261_p0)
}
  0x23   : > { %s3973_s1 = sld [smem:[#allocation22_spill]]  ;;  %s3276_s20 = scalar_lea.vmem %s3596_s30, 512 }
  0x24   : > { %p3277_p2 = scmp.ne.s32.totalorder %s3596_s30, %s3276_s20  ;;  %p3284_p9 = scmp.lt.s32.totalorder %s3596_s30, %s3596_s30 }
  0x25   : > { %p3285_p11 = scmp.lt.s32.totalorder %s3276_s20, %s3276_s20 }
  0x26   : > { %p3279_p5 = pnand %p3277_p2, %p3602_p7 }
  0x27   : > { %p3286_p10 = por %p3285_p11, %p3284_p9 }
  0x28   : > { %p3280_p8 = pneg %p3279_p5 }
  0x29   : > { %3125 = dma.hbm_to_vmem [thread:$0]  (!%p3592_p6), %s3973_s1, 128, %s333_s26, [#allocation7]  }
  0x2a   : > { %p3287_p12 = pnand %p3286_p10, %p3280_p8 }
  0x2c   : > { %3290 = shalt.err (!%p3287_p12)
}
  0x2d   : > { %s3478_s25 = smov 128   ;;  %s3479_s29 = smov 8  }
  0x2e   : > { %s3974_s4 = sld [smem:[#allocation24_spill]]  ;;  %s3302_s17 = scalar_lea.vmem %s3598_s15, 512 }
  0x2f   : > { %p3303_p13 = scmp.ne.s32.totalorder %s3598_s15, %s3302_s17  ;;  %p3310_p5 = scmp.lt.s32.totalorder %s3598_s15, %s3598_s15 }
  0x30   : > { %p3311_p8 = scmp.lt.s32.totalorder %s3302_s17, %s3302_s17 }
  0x31   : > { %p3305_p0 = pnand %p3303_p13, %p3602_p7 }
  0x32   : > { %p3312_p9 = por %p3311_p8, %p3310_p5 }
  0x33   : > { %p3306_p2 = pneg %p3305_p0 }
  0x34   : > { %3131 = dma.hbm_to_vmem [thread:$0]  (!%p3592_p6), %s3974_s4, 512, %s3596_s30, [#allocation10], %s3478_s25, %s3478_s25, %s3479_s29  }
  0x35   : > { %p3313_p11 = pnand %p3312_p9, %p3306_p2 }
  0x37   : > { %3316 = shalt.err (!%p3313_p11)
}
  0x38   : > { %s3975_s2 = sld [smem:[#allocation23_spill]]  ;;  %s3480_s30 = smov [#allocation11]  }
  0x39   : > { %s374_s20 = sshll.u32 %s3480_s30, 4  ;;  %s3481_s26 = smov [#allocation12]   ;;  %s375_s20 = int_to_ptr.vmem [resolvable:$true] %s374_s20 }
  0x3a   : > { %s390_s14 = sshll.u32 %s3481_s26, 4  ;;  %s3328_s17 = scalar_lea.vmem %s375_s20, 512  ;;  %s391_s14 = int_to_ptr.vmem [resolvable:$true] %s390_s14 }
  0x3b   : > { %p3329_p10 = scmp.ne.s32.totalorder %s375_s20, %s3328_s17  ;;  %p3336_p0 = scmp.lt.s32.totalorder %s375_s20, %s375_s20 }
  0x3c   : > { %p3337_p2 = scmp.lt.s32.totalorder %s3328_s17, %s3328_s17 }
  0x3d   : > { %p3331_p12 = pnand %p3329_p10, %p3602_p7 }
  0x3e   : > { %3128 = dma.hbm_to_vmem [thread:$0]  (!%p3592_p6), %s3975_s2, 512, %s3598_s15, [#allocation7], %s3478_s25, %s3478_s25, %s3479_s29  }
  0x3f   : > { %p3332_p13 = pneg %p3331_p12  ;;  %p3338_p5 = por %p3337_p2, %p3336_p0 }
  0x41   : > { %p3339_p8 = pnand %p3338_p5, %p3332_p13 }
  0x43   : > { %3342 = shalt.err (!%p3339_p8)
}
  0x44   : > { %s3976_s6 = sld [smem:[#allocation25_spill]]  ;;  %s3354_s19 = scalar_lea.vmem %s391_s14, 512 }
  0x45   : > { %p3355_p9 = scmp.ne.s32.totalorder %s391_s14, %s3354_s19  ;;  %p3362_p12 = scmp.lt.s32.totalorder %s391_s14, %s391_s14 }
  0x46   : > { %p3363_p0 = scmp.lt.s32.totalorder %s3354_s19, %s3354_s19 }
  0x47   : > { %p3357_p11 = pnand %p3355_p9, %p3602_p7 }
  0x48   : > { %p3364_p13 = por %p3363_p0, %p3362_p12 }
  0x49   : > { %p3358_p10 = pneg %p3357_p11 }
  0x4a   : > { %3134 = dma.hbm_to_vmem [thread:$0]  (!%p3592_p6), %s3976_s6, 512, %s375_s20, [#allocation10], %s3478_s25, %s3478_s25, %s3479_s29  }
  0x4b   : > { %p3365_p2 = pnand %p3364_p13, %p3358_p10 }
  0x4d   : > { %3368 = shalt.err (!%p3365_p2)
}
  0x4e   : > { %s3977_s8 = sld [smem:[#allocation26_spill]]  ;;  %s2834_s13 = sadd.s32 4294967294, %s3473_s24  }
  0x4f   : > { %s3665_s16 = sadd.s32 1, %s3473_s24   ;;  %s38_s20 = sadd.s32 1, %s3469_s23 }
  0x50   : > { %s35_s17 = ssub.s32 %s3473_s24, %s3665_s16  ;;  %p45_p7 = scmp.ne.s32.totalorder %s3469_s23, %s3465_s22 }
  0x51   : > { %p36_p5 = scmp.eq.s32.totalorder %s35_s17, 0  ;;  %p46_p8 = scmp.eq.s32.totalorder %s3473_s24, 0 }
  0x52   : > { %p51_p9 = scmp.ne.s32.totalorder %s3465_s22, %s3461_s21  ;;  %p306_p11 = scmp.eq.s32.totalorder %s3578_s27, 1 }
  0x53   : > { %s3677_s15 = scalar_select %p36_p5, %s3469_s23, %s38_s20  }
  0x54   : > { %3137 = dma.hbm_to_vmem [thread:$0]  (!%p3592_p6), %s3977_s8, 512, %s391_s14, [#allocation13], %s3478_s25, %s3478_s25, %s3479_s29  }
  0x55   : > { %3978 = sst [smem:[#allocation21_spill]] %s3677_s15  ;;  %p47_p10 = por %p46_p8, %p45_p7 }
  0x56   : > { %p3681_p12 = por %p3959_p1, %p51_p9  ;;  %p3685_p6 = por %p306_p11, %p45_p7 }
  0x57   : > { %p312_p0 = scmp.eq.s32.totalorder %s2834_s13, 1  ;;  %p3151_p13 = scmp.lt.s32.totalorder %s3473_s24, 2 }
  0x58   : > { %s3979_s18 = scalar_select %p3681_p12, 1, 0 }
  0x59   : > { %s3980_s25 = scalar_select %p3685_p6, 1, 0 }
  0x5a   : > { %s413_s29 = sand.u32 1, %s3469_s23   ;;  %p3691_p2 = por %p312_p0, %p51_p9 }
  0x5b   : > { %s2842_s19 = sshll.u32 %s413_s29, 3  ;;  %s2843_s30 = sshll.u32 %s3473_s24, 7 }
  0x5c   : > { %s3981_s14 = scalar_select %p3691_p2, 1, 0 }
  0x5d   : > { %s3699_s17 = scalar_lea.hbm %s3946_s0, %s2843_s30  ;;  %s417_s1 = scalar_lea.vmem [#allocation3], %s2842_s19 }
  0x5e   : > { %s424_s2 = sshll.u32 %s417_s1, 4  ;;  %p3701_p7 = pnand %p3151_p13, %p47_p10  ;;  %s425_s2 = int_to_ptr.vmem [resolvable:$true] %s424_s2 }
  0x5f   : > { %s414_s4 = scalar_lea.sflag [#allocation4], %s413_s29  ;;  %s3369_s6 = scalar_lea.hbm %s3699_s17, 128 }
  0x60   : > { %p3370_p5 = scmp.ne.s32.totalorder %s3699_s17, %s3369_s6  ;;  %p3371_p8 = pneg %p3701_p7 }
  0x61   : > { %s3374_s20 = scalar_lea.hbm %s3946_s0, 256  ;;  %p3375_p10 = scmp.lt.s32.totalorder %s3699_s17, %s3946_s0 }
  0x62   : > { %p3372_p9 = pnand %p3371_p8, %p3370_p5  ;;  %p3376_p0 = scmp.lt.s32.totalorder %s3374_s20, %s3369_s6 }
  0x64   : > { %p3373_p11 = pneg %p3372_p9  ;;  %p3377_p13 = por %p3376_p0, %p3375_p10 }
  0x66   : > { %p3378_p4 = pnand %p3377_p13, %p3373_p11 }
  0x68   : > { %3381 = shalt.err (!%p3378_p4)
}
  0x69   : > { %s3382_s1 = scalar_lea.vmem %s425_s2, 128  ;;  %s3482_s29 = smov [#allocation3]  }
  0x6a   : > { %p3383_p1 = scmp.ne.s32.totalorder %s425_s2, %s3382_s1  ;;  %s3387_s15 = sshll.u32 %s3482_s29, 4  ;;  %s3388_s15 = int_to_ptr.vmem [resolvable:$false] %s3387_s15 }
  0x6b   : > { %s3389_s23 = scalar_lea.vmem %s3388_s15, 256  ;;  %p3390_p5 = scmp.lt.s32.totalorder %s425_s2, %s3388_s15 }
  0x6c   : > { %p3385_p2 = pnand %p3383_p1, %p3371_p8  ;;  %p3391_p9 = scmp.lt.s32.totalorder %s3389_s23, %s3382_s1 }
  0x6e   : > { %p3386_p6 = pneg %p3385_p2  ;;  %p3392_p12 = por %p3391_p9, %p3390_p5 }
  0x70   : > { %p3393_p3 = pnand %p3392_p12, %p3386_p6 }
  0x72   : > { %3396 = shalt.err (!%p3393_p3)
}
  0x73   : > { %3141 = dma.hbm_to_vmem [thread:$0]  (!%p3701_p7), %s3699_s17, 128, %s425_s2, %s414_s4  }
  0x74   : > { %p3983_p11 = scmp.ne.s32.totalorder %s3970_s28, 0 }
  0x75   : > { %s3722_s6 = sand.u32 (!%p3983_p11), 1, %s3465_s22   ;;  %p3984_p1 = scmp.ne.s32.totalorder (!%p3983_p11), %s3979_s18, 0 }
  0x76   : > { %433 = sbr.rel (%p3983_p11) target bundleno = 3158 (0xc56), region = 68  ;;  %s2845_s8 = sshll.u32 (!%p3983_p11), %s3722_s6, 3 }
  0x77   : > { %s436_s15 = scalar_lea.sflag (!%p3983_p11), [#allocation4], %s3722_s6  ;;  %s439_s23 = scalar_lea.vmem (!%p3983_p11), [#allocation3], %s2845_s8 }
  0x7b   : > { %3440 = dma.done.wait (%p3984_p1), %s436_s15, 128  }
  0x7c   : > { %3442 = vsyncadd (%p3984_p1), %s436_s15, 4294967168  ;;  %p3985_p3 = scmp.eq.s32.totalorder %s3578_s27, 0 }
  0x7e   : > { %3444 = dma.done.wait (%p3985_p3), [#allocation7], 640   ;;  %p3986_p4 = pmov %p3985_p3 }
  0x7f   : > { %p3987_p12 = pmov %p3985_p3 }
  0x80   : > { %3446 = vsyncadd (%p3986_p4), [#allocation7], 4294966656 }
  0x81   : > { %3448 = dma.done.wait (%p3987_p12), [#allocation10], 1024   ;;  %p3988_p6 = pmov %p3985_p3 }
  0x82   : > { %p3989_p2 = pmov %p3985_p3 }
  0x83   : > { %3450 = vsyncadd (%p3988_p6), [#allocation10], 4294966272 }
  0x84   : > { %3452 = dma.done.wait (%p3989_p2), [#allocation13], 512   ;;  %p3990_p7 = pmov %p3989_p2 }
  0x85   : > { %v3483_v0 = vmov 0.0   ;;  %vm3484_vm0 = vmmov 0   ;;  %v503_v1 = vld [vmem:[#allocation8] sm:$0xff]  ;;  %v3750_v2 = vld [vmem:[%s439_s23] sm:$0xff]  ;;  %v501_v3 = vld [vmem:[#allocation6] sm:$0xff]  ;;  %vm511_vm1 = vcmask 64512  }
  0x86   : > { %3454 = vsyncadd (%p3990_p7), [#allocation13], 4294966784  ;;  %2970 = vmatprep.subr.mxu0 %v3483_v0  ;;  %2972 = vmatprep.mubr.msk.f32.mxu0 %vm3484_vm0, %v3483_v0  ;;  %v3753_v4 = vadd.f32 %v501_v3, %v3750_v2  ;;  %v673_v5 = vld [vmem:[#allocation9] sm:$0xff]  ;;  %s3485_s2 = smov 120   ;;  %v1034_v32 = vld [vmem:[#allocation8 + $0x8] sm:$0xff]  ;;  %s3486_s26 = smov 112  }
  0x87   : > { %2975 = vmatprep.subr.mxu1 %v3483_v0  ;;  %2977 = vmatprep.mubr.msk.f32.mxu1 %vm3484_vm0, %v3483_v0  ;;  %v590_v6 = vld [vmem:[#allocation11] sm:$0xff]  ;;  %v1208_v36 = vld [vmem:[#allocation9 + $0x8] sm:$0xff]  ;;  %vm958_vm2 = vcmask 130048   ;;  %s3487_s30 = smov 104   ;;  %s3488_s29 = smov 8   ;;  %vm1577_vm3 = vcmask 130112  }
  0x88   : > { %2971 = vmatpush3.msra.mxu0 %v503_v1  ;;  %2976 = vmatpush3.msra.mxu1 %v590_v6  ;;  %v2852_v7 = vld [vmem:[%s3949_s3] ss:$0 sm:$0xff]  ;;  %v2864_v40 = vld [vmem:[%s3949_s3 + $0x1] ss:$0 sm:$0xff]  ;;  %v1123_v57 = vld [vmem:[#allocation11 + $0x8] sm:$0xff]  ;;  %vm2122_vm4 = vcmask 195712  }
  0x89   : > { %2980 = vmatprep.subr.mxu0 %v3483_v0  ;;  %2973 = vmatmul.mubr.msk.f32.vlgmr.msra.gmra.mxu0 %vm511_vm1, %v3753_v4  ;;  %v2856_v16 = vld [vmem:[%s3951_s5] ss:$0 sm:$0xff]  ;;  %v1210_v61 = vld [vmem:[#allocation12 + $0x8] sm:$0xff]  ;;  %v2871_v1 = vld [vmem:[%s3951_s5 + $0x1] ss:$0 sm:$0xff]  ;;  %s3490_s19 = smov 24  }
  0x8a   : > { %2982 = vmatprep.mubr.msk.f32.mxu0 %vm3484_vm0, %v3483_v0  ;;  %2981 = vmatpush3.msra.mxu0 %v673_v5  ;;  %v2854_v18 = vld [vmem:[%s3953_s7] ss:$0 sm:$0xff]  ;;  %v2867_v5 = vld [vmem:[%s3953_s7 + $0x1] ss:$0 sm:$0xff]  ;;  %vm2667_vm5 = vcmask 261312   ;;  %vm2670_vm6 = vcmask 261120  }
  0x8b   : > { %2990 = vmatprep.subr.mxu0 %v3750_v2  ;;  %1043 = vrot.lane.b32.xlu0 %v3753_v4, %s3485_s2  ;;  %v674_v25 = vld [vmem:[#allocation12] sm:$0xff]  ;;  %s499_s4 = scalar_lea.vmem [#allocation14], %s2845_s8  ;;  %p3991_p10 = scmp.ne.s32.totalorder %s3980_s25, 0 }
  0x8c   : > { %2978 = vmatmul.mubr.msk.f32.vlgmr.msra.gmra.mxu1 %vm511_vm1, %v3753_v4  ;;  %2985 = vmatprep.subr.mxu1 %v3483_v0  ;;  %v2858_v49 = vld [vmem:[%s3955_s9] ss:$0 sm:$0xff]  ;;  %s2716_s28 = sshll.u32 %s499_s4, 4  ;;  %s3491_s20 = smov [#allocation14]   ;;  %s2717_s28 = int_to_ptr.vmem [resolvable:$true] %s2716_s28 }
  0x8d   : > { %2987 = vmatprep.mubr.msk.f32.mxu1 %vm3484_vm0, %v3483_v0  ;;  %1406 = vrot.lane.b32.xlu1 %v3750_v2, %s3485_s2  ;;  %s2911_s2 = sshll.u32 %s3578_s27, 7  ;;  %s3401_s27 = sshll.u32 %s3491_s20, 4  ;;  %s3402_s27 = int_to_ptr.vmem [resolvable:$false] %s3401_s27 }
  0x8e   : > { %2986 = vmatpush3.msra.mxu1 %v674_v25  ;;  %s2714_s13 = scalar_lea.hbm %s3958_s12, %s2911_s2  ;;  %s3403_s8 = scalar_lea.vmem %s3402_s27, 256 }
  0x8f   : > { %2995 = vmatprep.subr.mxu1 %v3483_v0  ;;  %p3404_p5 = scmp.lt.s32.totalorder %s2717_s28, %s3402_s27 }
  0x91   : > { %1589 = vrot.lane.b32.xlu1 %v3753_v4, %s3486_s26 }
  0xfd   : > { %v1044_v30 = vpop.permute.xlu0 %1043 }
  0xff   : > { %v1407_v62 = vpop.permute.xlu1 %1406 }
 0x149   : > { %v581_v8 = vpop.f32.mrf.mxu0 }
 0x14a   : > { %v582_v9 = vadd.f32 %v2852_v7, %v581_v8 }
 0x14b   : > { %v2974_v10 = vpop.f32.mrf.mxu0 }
 0x14c   : > { %v586_v11 = vmul.f32 0.70710677, %v582_v9  ;;  %v585_v13 = vmul.f32 0.5, %v582_v9  ;;  %v664_v19 = vpop.f32.mrf.mxu1 }
 0x14d   : > { %v665_v21 = vadd.f32 %v2854_v18, %v664_v19  ;;  %v1580_v19 = vld [vmem:[#allocation8 + $0x10] sm:$0xff] }
 0x14e   : > { %3205 = verf.f32 %v586_v11  ;;  %v2979_v23 = vpop.f32.mrf.mxu1 }
 0x14f   : > { %v669_v24 = vmul.f32 0.70710677, %v665_v21  ;;  %v668_v26 = vmul.f32 0.5, %v665_v21  ;;  %v1754_v23 = vld [vmem:[#allocation9 + $0x10] sm:$0xff] }
 0x151   : > { %3207 = verf.f32 %v669_v24 }
 0x15b   : > { %v3206_v12 = vpop.eup %3205 }
 0x15c   : > { %v588_v14 = vadd.f32 1.0, %v3206_v12 }
 0x15e   : > { %v589_v15 = vmul.f32 %v588_v14, %v585_v13  ;;  %v3208_v27 = vpop.eup %3207 }
 0x15f   : > { %v671_v28 = vadd.f32 1.0, %v3208_v27  ;;  %v2879_v27 = vld [vmem:[%s3949_s3 + $0x2] ss:$0 sm:$0xff] }
 0x160   : > { %2983 = vmatmul.mubr.msk.f32.vlgmr.msra.gmra.mxu0 %vm511_vm1, %v589_v15 }
 0x161   : > { %2991 = vmatpush3.msra.mxu0 %v3750_v2  ;;  %v672_v29 = vmul.f32 %v671_v28, %v668_v26 }
 0x162   : > { %3002 = vmatprep.subr.mxu0 %v3483_v0 }
 0x163   : > { %2988 = vmatmul.mubr.msk.f32.vlgmr.msra.gmra.mxu1 %vm511_vm1, %v672_v29 }
 0x164   : > { %2999 = vmatprep.mubr.msk.f32.mxu1 %vm3484_vm0, %v3483_v0 }
 0x220   : > { %v752_v17 = vpop.f32.mrf.mxu0 }
 0x221   : > { %v753_v20 = vadd.f32 %v2856_v16, %v752_v17  ;;  %v1590_v17 = vpop.permute.xlu1 %1589 }
 0x222   : > { %v2984_v22 = vpop.f32.mrf.mxu0 }
 0x223   : > { %835 = vxpose.xlu0.b32.start.end [1/1] (short) (narrow) %v753_v20, 16  ;;  %v831_v34 = vpop.f32.mrf.mxu1 }
 0x224   : > { %v832_v54 = vadd.f32 %v2858_v49, %v831_v34 }
 0x225   : > { %v2989_v35 = vpop.f32.mrf.mxu1 }
 0x250   : > { %1951 = vrot.lane.b32.xlu0 %v3750_v2, %s3486_s26  ;;  %s3397_s26 = scalar_lea.vmem %s2717_s28, 128 }
 0x251   : > { %p3398_p8 = scmp.ne.s32.totalorder %s2717_s28, %s3397_s26  ;;  %p3405_p9 = scmp.lt.s32.totalorder %s3403_s8, %s3397_s26 }
 0x253   : > { %p3399_p0 = pnand %p3398_p8, %p3991_p10  ;;  %p3406_p11 = por %p3405_p9, %p3404_p5 }
 0x255   : > { %p3400_p13 = pneg %p3399_p0 }
 0x257   : > { %p3407_p1 = pnand %p3406_p11, %p3400_p13 }
 0x29f   : > { %v851_v31 = vpop.trf.xlu0 }
 0x2a0   : > { %2992 = vmatprep.mubr.msk.f32.mxu0 %vm511_vm1, %v851_v31 }
 0x2a3   : > { %v852_v33 = vpop.trf.xlu0 }
 0x2a4   : > { %2993 = vmatmul.mubr.msk.f32.vlgmr.msra.gmra.mxu0 %vm511_vm1, %v852_v33 }
 0x2a5   : > { %3003 = vmatpush3.msra.mxu0 %v1034_v32  ;;  %3004 = vmatprep.mubr.msk.f32.mxu0 %vm3484_vm0, %v3483_v0 }
 0x2a6   : > { %3012 = vmatprep.subr.mxu0 %v3483_v0 }
 0x2a8   : > { %3005 = vmatmul.mubr.msk.f32.vlgmr.msra.gmra.mxu0 %vm511_vm1, %v1044_v30 }
 0x2a9   : > { %3014 = vmatprep.mubr.msk.f32.mxu0 %vm3484_vm0, %v3483_v0  ;;  %3013 = vmatpush3.msra.mxu0 %v1208_v36 }
 0x2aa   : > { %3022 = vmatprep.subr.mxu0 %v1407_v62 }
 0x2c2   : > { %v1952_v49 = vpop.permute.xlu0 %1951 }
 0x364   : > { %v2994_v37 = vpop.f32.mrf.mxu0 }
 0x365   : > { %v951_v38 = vmul.f32 0.70710677, %v2994_v37  ;;  %v949_v47 = vmul.f32 0.5, %v2994_v37  ;;  %v2873_v37 = vld [vmem:[%s3955_s9 + $0x1] ss:$0 sm:$0xff] }
 0x366   : > { %v939_v39 = vpop.f32.mrf.mxu0 }
 0x367   : > { %3209 = verf.f32 %v951_v38  ;;  %v950_v41 = vmul.f32 0.70710677, %v939_v39  ;;  %v948_v52 = vmul.f32 0.5, %v939_v39 }
 0x368   : > { %v1113_v42 = vpop.f32.mrf.mxu0 }
 0x369   : > { %3211 = verf.f32 %v950_v41  ;;  %v1114_v43 = vadd.f32 %v2864_v40, %v1113_v42 }
 0x36a   : > { %v3006_v44 = vpop.f32.mrf.mxu0 }
 0x36b   : > { %v1118_v45 = vmul.f32 0.70710677, %v1114_v43  ;;  %v1117_v58 = vmul.f32 0.5, %v1114_v43  ;;  %v1669_v44 = vld [vmem:[#allocation11 + $0x10] sm:$0xff] }
 0x36d   : > { %3213 = verf.f32 %v1118_v45 }
 0x374   : > { %v3210_v46 = vpop.eup %3209 }
 0x375   : > { %v955_v48 = vadd.f32 1.0, %v3210_v46 }
 0x376   : > { %v3212_v50 = vpop.eup %3211 }
 0x377   : > { %v957_v51 = vmul.f32 %v955_v48, %v949_v47  ;;  %v954_v53 = vadd.f32 1.0, %v3212_v50  ;;  %v1756_v48 = vld [vmem:[#allocation12 + $0x10] sm:$0xff] }
 0x379   : > { %v956_v55 = vmul.f32 %v954_v53, %v948_v52  ;;  %2996 = vmatpush3.msra.mxu1 %v957_v51  ;;  %v2886_v51 = vld [vmem:[%s3951_s5 + $0x2] ss:$0 sm:$0xff] }
 0x37a   : > { %v3214_v56 = vpop.eup %3213  ;;  %2997 = vmatprep.subr.mxu1 %v3483_v0 }
 0x37b   : > { %v1120_v59 = vadd.f32 1.0, %v3214_v56  ;;  %2998 = vmatpush3.msra.mxu1 %v956_v55 }
 0x37c   : > { %3000 = vmatmul.mubr.msk.f32.vlgmr.msra.gmra.mxu1 %vm958_vm2, %v832_v54  ;;  %3007 = vmatprep.subr.mxu1 %v3483_v0 }
 0x37d   : > { %v1121_v60 = vmul.f32 %v1120_v59, %v1117_v58  ;;  %3008 = vmatpush3.msra.mxu1 %v1123_v57  ;;  %3009 = vmatprep.mubr.msk.f32.mxu1 %vm3484_vm0, %v3483_v0 }
 0x37e   : > { %3017 = vmatprep.subr.mxu1 %v3483_v0 }
 0x37f   : > { %3015 = vmatmul.mubr.msk.f32.vlgmr.msra.gmra.mxu0 %vm511_vm1, %v1121_v60 }
 0x380   : > { %3010 = vmatmul.mubr.msk.f32.vlgmr.msra.gmra.mxu1 %vm511_vm1, %v1044_v30  ;;  %3023 = vmatpush3.msra.mxu0 %v1407_v62 }
 0x381   : > { %3019 = vmatprep.mubr.msk.f32.mxu1 %vm3484_vm0, %v3483_v0  ;;  %3018 = vmatpush3.msra.mxu1 %v1210_v61 }
 0x382   : > { %3027 = vmatprep.subr.mxu1 %v3483_v0  ;;  %3034 = vmatprep.subr.mxu0 %v3483_v0 }
 0x43c   : > { %v1028_v63 = vpop.f32.mrf.mxu1 }
 0x43d   : > { %1032 = vst.msk [vmem:[#allocation2] sm:$0xff] %vm511_vm1, %v1028_v63 }
 0x43e   : > { %v3001_v3 = vpop.f32.mrf.mxu1 }
 0x43f   : > { %v1290_v6 = vpop.f32.mrf.mxu0 }
 0x440   : > { %v1291_v7 = vadd.f32 %v2871_v1, %v1290_v6  ;;  %v1198_v8 = vpop.f32.mrf.mxu1  ;;  %v2125_v1 = vld [vmem:[#allocation8 + $0x18] sm:$0xff] }
 0x441   : > { %v1199_v9 = vadd.f32 %v2867_v5, %v1198_v8  ;;  %v3016_v10 = vpop.f32.mrf.mxu0 }
 0x442   : > { %1373 = vxpose.xlu1.b32.start.end [1/1] (short) (narrow) %v1291_v7, 16  ;;  %v3011_v11 = vpop.f32.mrf.mxu1 }
 0x443   : > { %v1203_v12 = vmul.f32 0.70710677, %v1199_v9  ;;  %v1202_v14 = vmul.f32 0.5, %v1199_v9  ;;  %v2299_v9 = vld [vmem:[#allocation9 + $0x18] sm:$0xff] }
 0x445   : > { %3215 = verf.f32 %v1203_v12 }
 0x452   : > { %v3216_v13 = vpop.eup %3215 }
 0x453   : > { %v1205_v15 = vadd.f32 1.0, %v3216_v13  ;;  %v2894_v13 = vld [vmem:[%s3949_s3 + $0x3] ss:$0 sm:$0xff] }
 0x455   : > { %v1206_v16 = vmul.f32 %v1205_v15, %v1202_v14 }
 0x457   : > { %3020 = vmatmul.mubr.msk.f32.vlgmr.msra.gmra.mxu1 %vm511_vm1, %v1206_v16 }
 0x458   : > { %3031 = vmatprep.mubr.msk.f32.mxu1 %vm3484_vm0, %v3483_v0 }
 0x464   : > { %2134 = vrot.lane.b32.xlu1 %v3753_v4, %s3487_s30  ;;  %v2882_v4 = vld [vmem:[%s3953_s7 + $0x2] ss:$0 sm:$0xff] }
 0x468   : > { %2496 = vrot.lane.b32.xlu1 %v3750_v2, %s3487_s30  ;;  %s3489_s30 = smov 16  }
 0x4be   : > { %v1389_v18 = vpop.trf.xlu1 }
 0x4bf   : > { %3024 = vmatprep.mubr.msk.f32.mxu0 %vm511_vm1, %v1389_v18 }
 0x4c2   : > { %v1390_v20 = vpop.trf.xlu1 }
 0x4c3   : > { %3025 = vmatmul.mubr.msk.f32.vlgmr.msra.gmra.mxu0 %vm511_vm1, %v1390_v20 }
 0x4c4   : > { %3035 = vmatpush3.msra.mxu0 %v1580_v19  ;;  %3036 = vmatprep.mubr.msk.f32.mxu0 %vm3484_vm0, %v3483_v0 }
 0x4c5   : > { %3044 = vmatprep.subr.mxu0 %v3483_v0 }
 0x4c7   : > { %3037 = vmatmul.mubr.msk.f32.vlgmr.msra.gmra.mxu0 %vm511_vm1, %v1590_v17 }
 0x4c8   : > { %3046 = vmatprep.mubr.msk.f32.mxu0 %vm3484_vm0, %v3483_v0  ;;  %3045 = vmatpush3.msra.mxu0 %v1754_v23  ;;  %v2888_v23 = vld [vmem:[%s3955_s9 + $0x2] ss:$0 sm:$0xff] }
 0x4c9   : > { %3054 = vmatprep.subr.mxu0 %v1952_v49 }
 0x4d6   : > { %v2135_v5 = vpop.permute.xlu1 %2134 }
 0x517   : > { %v1369_v21 = vpop.f32.mrf.mxu1 }
 0x518   : > { %v1370_v43 = vadd.f32 %v2873_v37, %v1369_v21  ;;  %v2901_v37 = vld [vmem:[%s3951_s5 + $0x3] ss:$0 sm:$0xff] }
 0x519   : > { %v3021_v22 = vpop.f32.mrf.mxu1 }
 0x583   : > { %v3026_v24 = vpop.f32.mrf.mxu0 }
 0x584   : > { %v1493_v25 = vmul.f32 0.70710677, %v3026_v24  ;;  %v1491_v34 = vmul.f32 0.5, %v3026_v24 }
 0x585   : > { %v1481_v26 = vpop.f32.mrf.mxu0 }
 0x586   : > { %3217 = verf.f32 %v1493_v25  ;;  %v1492_v28 = vmul.f32 0.70710677, %v1481_v26  ;;  %v1490_v39 = vmul.f32 0.5, %v1481_v26 }
 0x587   : > { %v1659_v29 = vpop.f32.mrf.mxu0 }
 0x588   : > { %3219 = verf.f32 %v1492_v28  ;;  %v1660_v30 = vadd.f32 %v2879_v27, %v1659_v29 }
 0x589   : > { %v3038_v31 = vpop.f32.mrf.mxu0 }
 0x58a   : > { %v1664_v32 = vmul.f32 0.70710677, %v1660_v30  ;;  %v1663_v45 = vmul.f32 0.5, %v1660_v30  ;;  %v2214_v30 = vld [vmem:[#allocation11 + $0x18] sm:$0xff] }
 0x58c   : > { %3221 = verf.f32 %v1664_v32 }
 0x593   : > { %v3218_v33 = vpop.eup %3217 }
 0x594   : > { %v1497_v35 = vadd.f32 1.0, %v3218_v33 }
 0x595   : > { %v3220_v36 = vpop.eup %3219 }
 0x596   : > { %v1499_v38 = vmul.f32 %v1497_v35, %v1491_v34  ;;  %v1496_v40 = vadd.f32 1.0, %v3220_v36  ;;  %v2301_v34 = vld [vmem:[#allocation12 + $0x18] sm:$0xff]  ;;  %v2497_v35 = vpop.permute.xlu1 %2496 }
 0x598   : > { %v1498_v41 = vmul.f32 %v1496_v40, %v1490_v39  ;;  %3028 = vmatpush3.msra.mxu1 %v1499_v38  ;;  %v2897_v39 = vld [vmem:[%s3953_s7 + $0x3] ss:$0 sm:$0xff] }
 0x599   : > { %v3222_v42 = vpop.eup %3221  ;;  %3029 = vmatprep.subr.mxu1 %v3483_v0 }
 0x59a   : > { %v1666_v46 = vadd.f32 1.0, %v3222_v42  ;;  %3030 = vmatpush3.msra.mxu1 %v1498_v41 }
 0x59b   : > { %3032 = vmatmul.mubr.msk.f32.vlgmr.msra.gmra.mxu1 %vm958_vm2, %v1370_v43  ;;  %3039 = vmatprep.subr.mxu1 %v3483_v0 }
 0x59c   : > { %v1667_v47 = vmul.f32 %v1666_v46, %v1663_v45  ;;  %3040 = vmatpush3.msra.mxu1 %v1669_v44  ;;  %3041 = vmatprep.mubr.msk.f32.mxu1 %vm3484_vm0, %v3483_v0 }
 0x59d   : > { %3049 = vmatprep.subr.mxu1 %v3483_v0 }
 0x59e   : > { %3047 = vmatmul.mubr.msk.f32.vlgmr.msra.gmra.mxu0 %vm511_vm1, %v1667_v47 }
 0x59f   : > { %3042 = vmatmul.mubr.msk.f32.vlgmr.msra.gmra.mxu1 %vm511_vm1, %v1590_v17  ;;  %3055 = vmatpush3.msra.mxu0 %v1952_v49 }
 0x5a0   : > { %3051 = vmatprep.mubr.msk.f32.mxu1 %vm3484_vm0, %v3483_v0  ;;  %3050 = vmatpush3.msra.mxu1 %v1756_v48 }
 0x5a1   : > { %3059 = vmatprep.subr.mxu1 %v3483_v0  ;;  %3066 = vmatprep.subr.mxu0 %v3483_v0 }
 0x65b   : > { %v1569_v50 = vpop.f32.mrf.mxu1 }
 0x65d   : > { %v3033_v52 = vpop.f32.mrf.mxu1 }
 0x65e   : > { %v1836_v53 = vpop.f32.mrf.mxu0 }
 0x65f   : > { %v1837_v54 = vadd.f32 %v2886_v51, %v1836_v53  ;;  %v1744_v55 = vpop.f32.mrf.mxu1 }
 0x660   : > { %v1745_v56 = vadd.f32 %v2882_v4, %v1744_v55  ;;  %v3048_v2 = vpop.f32.mrf.mxu0 }
 0x661   : > { %1919 = vxpose.xlu0.b32.start.end [1/1] (short) (narrow) %v1837_v54, 16  ;;  %v3043_v57 = vpop.f32.mrf.mxu1 }
 0x662   : > { %v1749_v58 = vmul.f32 0.70710677, %v1745_v56  ;;  %v1748_v60 = vmul.f32 0.5, %v1745_v56 }
 0x664   : > { %3223 = verf.f32 %v1749_v58 }
 0x671   : > { %v3224_v59 = vpop.eup %3223 }
 0x672   : > { %v1751_v61 = vadd.f32 1.0, %v3224_v59 }
 0x674   : > { %v1752_v62 = vmul.f32 %v1751_v61, %v1748_v60 }
 0x676   : > { %3052 = vmatmul.mubr.msk.f32.vlgmr.msra.gmra.mxu1 %vm511_vm1, %v1752_v62  ;;  %v2903_v62 = vld [vmem:[%s3955_s9 + $0x3] ss:$0 sm:$0xff] }
 0x677   : > { %3063 = vmatprep.mubr.msk.f32.mxu1 %vm3484_vm0, %v3483_v0 }
 0x68e   : > { %1574 = vrot.lane.b32.xlu0 %v1569_v50, %s3488_s29 }
 0x6dd   : > { %v1935_v63 = vpop.trf.xlu0 }
 0x6de   : > { %3056 = vmatprep.mubr.msk.f32.mxu0 %vm511_vm1, %v1935_v63 }
 0x6e1   : > { %v1936_v3 = vpop.trf.xlu0 }
 0x6e2   : > { %3057 = vmatmul.mubr.msk.f32.vlgmr.msra.gmra.mxu0 %vm511_vm1, %v1936_v3 }
 0x6e3   : > { %3067 = vmatpush3.msra.mxu0 %v2125_v1  ;;  %3068 = vmatprep.mubr.msk.f32.mxu0 %vm3484_vm0, %v3483_v0 }
 0x6e4   : > { %3076 = vmatprep.subr.mxu0 %v3483_v0 }
 0x6e6   : > { %3069 = vmatmul.mubr.msk.f32.vlgmr.msra.gmra.mxu0 %vm511_vm1, %v2135_v5 }
 0x6e7   : > { %3078 = vmatprep.mubr.msk.f32.mxu0 %vm3484_vm0, %v3483_v0  ;;  %3077 = vmatpush3.msra.mxu0 %v2299_v9 }
 0x6e8   : > { %3086 = vmatprep.subr.mxu0 %v2497_v35 }
 0x700   : > { %v1575_v6 = vpop.permute.xlu0 %1574 }
 0x701   : > { %1578 = vst.msk [vmem:[#allocation2] sm:$0xff] %vm1577_vm3, %v1575_v6 }
 0x736   : > { %v1915_v7 = vpop.f32.mrf.mxu1 }
 0x737   : > { %v1916_v29 = vadd.f32 %v2888_v23, %v1915_v7 }
 0x738   : > { %v3053_v8 = vpop.f32.mrf.mxu1 }
 0x7a2   : > { %v3058_v10 = vpop.f32.mrf.mxu0 }
 0x7a3   : > { %v2038_v11 = vmul.f32 0.70710677, %v3058_v10  ;;  %v2036_v20 = vmul.f32 0.5, %v3058_v10 }
 0x7a4   : > { %v2026_v12 = vpop.f32.mrf.mxu0 }
 0x7a5   : > { %3225 = verf.f32 %v2038_v11  ;;  %v2037_v14 = vmul.f32 0.70710677, %v2026_v12  ;;  %v2035_v25 = vmul.f32 0.5, %v2026_v12 }
 0x7a6   : > { %v2204_v15 = vpop.f32.mrf.mxu0 }
 0x7a7   : > { %3227 = verf.f32 %v2037_v14  ;;  %v2205_v16 = vadd.f32 %v2894_v13, %v2204_v15 }
 0x7a8   : > { %v3070_v17 = vpop.f32.mrf.mxu0 }
 0x7a9   : > { %v2209_v18 = vmul.f32 0.70710677, %v2205_v16  ;;  %v2208_v31 = vmul.f32 0.5, %v2205_v16 }
 0x7ab   : > { %3229 = verf.f32 %v2209_v18 }
 0x7b2   : > { %v3226_v19 = vpop.eup %3225 }
 0x7b3   : > { %v2042_v21 = vadd.f32 1.0, %v3226_v19 }
 0x7b4   : > { %v3228_v22 = vpop.eup %3227 }
 0x7b5   : > { %v2044_v24 = vmul.f32 %v2042_v21, %v2036_v20  ;;  %v2041_v26 = vadd.f32 1.0, %v3228_v22  ;;  %v2908_v20 = vld [vmem:[%s3956_s10] ss:$0 sm:$0xff] }
 0x7b6   : > { %v2909_v22 = vld [vmem:[%s3957_s11] ss:$0 sm:$0xff] }
 0x7b7   : > { %v2043_v27 = vmul.f32 %v2041_v26, %v2035_v25  ;;  %3060 = vmatpush3.msra.mxu1 %v2044_v24 }
 0x7b8   : > { %v3230_v28 = vpop.eup %3229  ;;  %3061 = vmatprep.subr.mxu1 %v3483_v0 }
 0x7b9   : > { %v2211_v32 = vadd.f32 1.0, %v3230_v28  ;;  %3062 = vmatpush3.msra.mxu1 %v2043_v27 }
 0x7ba   : > { %3064 = vmatmul.mubr.msk.f32.vlgmr.msra.gmra.mxu1 %vm958_vm2, %v1916_v29  ;;  %3071 = vmatprep.subr.mxu1 %v3483_v0 }
 0x7bb   : > { %v2212_v33 = vmul.f32 %v2211_v32, %v2208_v31  ;;  %3072 = vmatpush3.msra.mxu1 %v2214_v30  ;;  %3073 = vmatprep.mubr.msk.f32.mxu1 %vm3484_vm0, %v3483_v0 }
 0x7bc   : > { %3081 = vmatprep.subr.mxu1 %v3483_v0 }
 0x7bd   : > { %3079 = vmatmul.mubr.msk.f32.vlgmr.msra.gmra.mxu0 %vm511_vm1, %v2212_v33 }
 0x7be   : > { %3074 = vmatmul.mubr.msk.f32.vlgmr.msra.gmra.mxu1 %vm511_vm1, %v2135_v5  ;;  %3087 = vmatpush3.msra.mxu0 %v2497_v35 }
 0x7bf   : > { %3083 = vmatprep.mubr.msk.f32.mxu1 %vm3484_vm0, %v3483_v0  ;;  %3082 = vmatpush3.msra.mxu1 %v2301_v34 }
 0x7c0   : > { %3091 = vmatprep.subr.mxu1 %v3483_v0 }
 0x87a   : > { %v2114_v36 = vpop.f32.mrf.mxu1 }
 0x87c   : > { %v3065_v38 = vpop.f32.mrf.mxu1 }
 0x87d   : > { %v2381_v40 = vpop.f32.mrf.mxu0 }
 0x87e   : > { %v2382_v41 = vadd.f32 %v2901_v37, %v2381_v40  ;;  %v2289_v42 = vpop.f32.mrf.mxu1 }
 0x87f   : > { %v2290_v43 = vadd.f32 %v2897_v39, %v2289_v42  ;;  %v3080_v44 = vpop.f32.mrf.mxu0 }
 0x880   : > { %2464 = vxpose.xlu1.b32.start.end [1/1] (short) (narrow) %v2382_v41, 16  ;;  %v3075_v45 = vpop.f32.mrf.mxu1 }
 0x881   : > { %v2294_v46 = vmul.f32 0.70710677, %v2290_v43  ;;  %v2293_v48 = vmul.f32 0.5, %v2290_v43 }
 0x883   : > { %3231 = verf.f32 %v2294_v46 }
 0x890   : > { %v3232_v47 = vpop.eup %3231 }
 0x891   : > { %v2296_v49 = vadd.f32 1.0, %v3232_v47 }
 0x893   : > { %v2297_v50 = vmul.f32 %v2296_v49, %v2293_v48 }
 0x895   : > { %3084 = vmatmul.mubr.msk.f32.vlgmr.msra.gmra.mxu1 %vm511_vm1, %v2297_v50 }
 0x896   : > { %3095 = vmatprep.mubr.msk.f32.mxu1 %vm3484_vm0, %v3483_v0 }
 0x8a2   : > { %2119 = vrot.lane.b32.xlu1 %v2114_v36, %s3489_s30  ;;  %s2703_s30 = scalar_lea.sflag [#allocation5], %s3722_s6 }
 0x8fc   : > { %v2480_v51 = vpop.trf.xlu1 }
 0x8fd   : > { %3088 = vmatprep.mubr.msk.f32.mxu0 %vm511_vm1, %v2480_v51 }
 0x900   : > { %v2481_v52 = vpop.trf.xlu1 }
 0x901   : > { %3089 = vmatmul.mubr.msk.f32.vlgmr.msra.gmra.mxu0 %vm511_vm1, %v2481_v52 }
 0x914   : > { %v2120_v4 = vpop.permute.xlu1 %2119 }
 0x915   : > { %2123 = vst.msk [vmem:[#allocation2] sm:$0xff] %vm2122_vm4, %v2120_v4 }
 0x955   : > { %v2460_v53 = vpop.f32.mrf.mxu1 }
 0x956   : > { %v2461_v6 = vadd.f32 %v2903_v62, %v2460_v53 }
 0x957   : > { %v3085_v54 = vpop.f32.mrf.mxu1 }
 0x9c1   : > { %v3090_v55 = vpop.f32.mrf.mxu0 }
 0x9c2   : > { %v2583_v56 = vmul.f32 0.70710677, %v3090_v55  ;;  %v2581_v59 = vmul.f32 0.5, %v3090_v55 }
 0x9c3   : > { %v2571_v2 = vpop.f32.mrf.mxu0 }
 0x9c4   : > { %3233 = verf.f32 %v2583_v56  ;;  %v2582_v57 = vmul.f32 0.70710677, %v2571_v2  ;;  %v2580_v1 = vmul.f32 0.5, %v2571_v2 }
 0x9c6   : > { %3235 = verf.f32 %v2582_v57 }
 0x9d1   : > { %v3234_v58 = vpop.eup %3233 }
 0x9d2   : > { %v2587_v60 = vadd.f32 1.0, %v3234_v58 }
 0x9d3   : > { %v3236_v61 = vpop.eup %3235 }
 0x9d4   : > { %v2589_v63 = vmul.f32 %v2587_v60, %v2581_v59  ;;  %v2586_v3 = vadd.f32 1.0, %v3236_v61 }
 0x9d6   : > { %v2588_v5 = vmul.f32 %v2586_v3, %v2580_v1  ;;  %3092 = vmatpush3.msra.mxu1 %v2589_v63 }
 0x9d7   : > { %3093 = vmatprep.subr.mxu1 %v3483_v0 }
 0x9d8   : > { %3094 = vmatpush3.msra.mxu1 %v2588_v5 }
 0x9d9   : > { %3096 = vmatmul.mubr.msk.f32.vlgmr.msra.gmra.mxu1 %vm958_vm2, %v2461_v6 }
 0xa99   : > { %v2659_v7 = vpop.f32.mrf.mxu1 }
 0xa9a   : > { %2664 = vrot.lane.b32.xlu0 %v2659_v7, %s3490_s19 }
 0xa9b   : > { %v3097_v8 = vpop.f32.mrf.mxu1 }
 0xb0c   : > { %v2665_v9 = vpop.permute.xlu0 %2664 }
 0xb0d   : > { %2668 = vst.msk [vmem:[#allocation2] sm:$0xff] %vm2667_vm5, %v2665_v9 }
 0xb14   : > { %v2669_v10 = vld [vmem:[#allocation2] sm:$0xff] }
 0xb15   : > { %v2671_v11 = vsel %vm2670_vm6, %v2669_v10, 0.0 }
 0xb16   : > { %2672 = vadd.xlane.f32.xlu0 %v2671_v11 }
 0xb9f   : > { %v2673_v12 = vpop.xlane.xlu0 %2672 }
 0xba0   : > { %v2675_v13 = vmul.f32 0.03125, %v2673_v12 }
 0xba2   : > { %v2676_v0 = vsub.f32 %v2669_v10, %v2675_v13 }
 0xba4   : > { %v2677_v14 = vmul.f32 %v2676_v0, %v2676_v0 }
 0xba6   : > { %v2678_v15 = vsel %vm2670_vm6, %v2677_v14, 0.0 }
 0xba7   : > { %2679 = vadd.xlane.f32.xlu1 %v2678_v15 }
 0xc30   : > { %v2680_v16 = vpop.xlane.xlu1 %2679 }
 0xc31   : > { %v2681_v17 = vmul.f32 0.03125, %v2680_v16 }
 0xc33   : > { %v2682_v18 = vadd.f32 1e-05, %v2681_v17 }
 0xc35   : > { %3237 = vrsqrt.f32 %v2682_v18 }
 0xc42   : > { %v3238_v19 = vpop.eup %3237 }
 0xc43   : > { %v2684_v21 = vmul.f32 %v3238_v19, %v2676_v0 }
 0xc45   : > { %v2692_v23 = vmul.f32 %v2908_v20, %v2684_v21 }
 0xc47   : > { %v2700_v24 = vadd.f32 %v2909_v22, %v2692_v23 }
 0xc49   : > { %2701 = vst.msk [vmem:[%s499_s4] sm:$0xff] %vm2670_vm6, %v2700_v24 }
 0xc4a   : > { %3410 = shalt.err (!%p3407_p1)
}
 0xc4b   : > { %s3411_s19 = scalar_lea.hbm %s2714_s13, 128  ;;  %s3415_s29 = scalar_lea.hbm %s3958_s12, 256 }
 0xc4c   : > { %p3412_p3 = scmp.ne.s32.totalorder %s2714_s13, %s3411_s19  ;;  %p3416_p6 = scmp.lt.s32.totalorder %s2714_s13, %s3958_s12 }
 0xc4d   : > { %p3417_p2 = scmp.lt.s32.totalorder %s3415_s29, %s3411_s19 }
 0xc4e   : > { %p3413_p4 = pnand %p3412_p3, %p3991_p10 }
 0xc4f   : > { %p3418_p7 = por %p3417_p2, %p3416_p6 }
 0xc50   : > { %p3414_p12 = pneg %p3413_p4 }
 0xc52   : > { %p3419_p8 = pnand %p3418_p7, %p3414_p12 }
 0xc54   : > { %3422 = shalt.err (!%p3419_p8)
}
 0xc55   : > { %3120 = dma.vmem_to_hbm [thread:$0]  (%p3991_p10), %s2717_s28, 128, %s2714_s13, %s2703_s30  }
 0xc56 PF: > { %s2728_s2 = sand.u32 1, %s3461_s21   ;;  %p3992_p0 = scmp.ne.s32.totalorder %s3981_s14, 0 }
 0xc57   : > { %p3993_p13 = scmp.ge.s32.totalorder %s3473_s24, 2  ;;  %s2729_s4 = scalar_lea.sflag [#allocation5], %s2728_s2 }
 0xc59   : > { %p3143_p5 = pnand %p3993_p13, %p3992_p0 }
 0xc5b   : > { %p3144_p9 = pneg %p3143_p5 }
 0xc5d   : > { %3456 = dma.done.wait (%p3144_p9), %s2729_s4, 128  }
 0xc5e   : > { %3458 = vsyncadd (%p3144_p9), %s2729_s4, 4294967168  ;;  %s3994_s18 = sld [smem:[#allocation20_spill]]  ;;  %p28_p11 = scmp.ge.s32.totalorder %s3665_s16, 4  }
 0xc5f   : > { %s3995_s23 = sld [smem:[#allocation21_spill]]  ;;  %s3996_s21 = smov %s3465_s22 }
 0xc60   : > { %s3998_s24 = smov %s3665_s16  ;;  %30 = sbr.rel (!%p28_p11) target bundleno = 14 (0xe), region = 157 }
 0xc64   : > { %s3997_s22 = smov %s3994_s18 }
 0xc65   :  { %2734 = vsyncpa [#allocation4], 1 }
 0xc66   :  { %2736 = vsyncpa [#allocation4 + $0x1], 1 }
 0xc67   :  { %2737 = vsyncpa [#allocation7], 1 }
 0xc68   :  { %2738 = vsyncpa [#allocation10], 1 }
 0xc69   :  { %2739 = vsyncpa [#allocation13], 1 }
 0xc6a   :  { %2740 = vsyncpa [#allocation5], 1 }
 0xc6b   :  { %2742 = vsyncpa [#allocation5 + $0x1], 1 }

</bundles_post_ra>
